<compile_context>
chip_gen: v7x
topology: tpu7x:2x2x1
jax: 0.10.0
libtpu: 0.0.40
codegen_flags: <defaults>
</compile_context>

<pallas_src>
import functools

import numpy as np
import jax
import jax.numpy as jnp
from jax import lax
from jax.experimental import pallas as pl
from jax.experimental.pallas import tpu as pltpu

NEG_SLOPE = 0.01     # torch.nn.LeakyReLU default negative_slope
LANE = 128
PAD_TOP = 16         # row offset of the image interior inside the bf16 pad scratch

SOBEL_X = ((1.0, 0.0, -1.0), (2.0, 0.0, -2.0), (1.0, 0.0, -1.0))
SOBEL_Y = ((1.0, 2.0, 1.0), (0.0, 0.0, 0.0), (-1.0, -2.0, -1.0))


def _leaky(v):
    return jnp.maximum(v, NEG_SLOPE * v)


def _round_up(x, m):
    return (x + m - 1) // m * m


# --------------------------- the Pallas kernel ---------------------------

def drb_kernel(x_ref, w1_ref, b1_ref, wb_ref, bb_ref, w3_ref, b3_ref,
               we_ref, be_ref, out_ref, pad_ref, *, H, W, C2):
    WC2 = W * C2
    TOP = PAD_TOP

    # --- Conv1 (1x1) + LeakyReLU: f32 block-diag matmul over the image tile.
    out1 = _leaky(jnp.dot(x_ref[...], w1_ref[...],
                          preferred_element_type=jnp.float32) + b1_ref[...])

    # --- bf16 row-padded scratch for the KxK convs.  Width padding is baked
    # into the banded weights, so only row halos are needed; they are zeroed
    # with two small stores and the interior is one aligned lane-dense store.
    zero8 = jnp.zeros((8, WC2), jnp.bfloat16)
    pad_ref[TOP - 8:TOP, :] = zero8                 # top halo rows (y = -3..-1)
    pad_ref[TOP + H:TOP + H + 8, :] = zero8         # bottom halo rows (y = H..H+2)
    pad_ref[TOP:TOP + H, :] = out1.astype(jnp.bfloat16)

    # --- Fused banded 3x3/5x5/7x7 convs: ONE bf16 matmul with K = 7*W*C2.
    # slab d holds out1 shifted by (d-3) rows, zero outside the image.
    slabs = [pad_ref[TOP - 3 + d:TOP - 3 + d + H, :] for d in range(7)]
    lhs = jnp.concatenate(slabs, axis=1)                      # (H, 7*W*C2) bf16
    z = _leaky(jnp.dot(lhs, wb_ref[...],
                       preferred_element_type=jnp.float32) + bb_ref[...])
    sum3 = z[:, 0:WC2] + z[:, WC2:2 * WC2] + z[:, 2 * WC2:3 * WC2]

    # --- Depthwise Sobel on out1, separable ([1,2,1] (x) [1,0,-1]).
    # Width shifts: lane rolls (+/- C2 lanes) + border masks on the f32 out1.
    # Row shifts: re-use the d=2 / d=4 bf16 slabs (halo rows give zero pad).
    lane_idx = lax.broadcasted_iota(jnp.int32, (H, WC2), 1)

    def width_shifts(v):                  # v[y, w]  ->  (v[y, w-1], v[y, w+1])
        m1 = jnp.where(lane_idx >= C2, pltpu.roll(v, C2, axis=1), 0.0)
        p1 = jnp.where(lane_idx < WC2 - C2,
                       pltpu.roll(v, WC2 - C2, axis=1), 0.0)
        return m1, p1

    up = slabs[2].astype(jnp.float32)     # out1 at row y-1 (zero at y = 0)
    dn = slabs[4].astype(jnp.float32)     # out1 at row y+1 (zero at y = H-1)
    u_m1, u_p1 = width_shifts(up)
    c_m1, c_p1 = width_shifts(out1)
    d_m1, d_p1 = width_shifts(dn)
    sobelx = (u_m1 - u_p1) + 2.0 * (c_m1 - c_p1) + (d_m1 - d_p1)
    sobely = (u_m1 + 2.0 * up + u_p1) - (d_m1 + 2.0 * dn + d_p1)
    sob = jnp.abs(sobelx) + jnp.abs(sobely)

    # out24 and out25 in the torch module are both sobel(out1) -> contributes 2x.
    out3 = out1 + sum3 + 2.0 * sob

    out4 = _leaky(jnp.dot(out3, w3_ref[...],
                          preferred_element_type=jnp.float32) + b3_ref[...])
    out5 = x_ref[...] + out4              # re-read x: shrinks its live range
    out6 = _leaky(jnp.dot(out5, we_ref[...],
                          preferred_element_type=jnp.float32) + be_ref[...])
    out_ref[...] = out6.astype(out_ref.dtype)     # full 128-lane unmasked store


# ------------------ one-time host-side weight packing ---------------------

def pack_drb_params(p, W, in_lanes, out_lanes):
    """Pack HWIO conv weights into the fused block-diag / banded layouts used
    by the kernel (numpy, once).  The banded KxK weights are bf16 (they feed
    the only large matmul); 1x1 weights and all biases stay f32."""
    Cin = p['w1'].shape[2]
    C2 = p['w1'].shape[3]
    Cout = p['we'].shape[3]
    WC2 = W * C2

    def block_diag(w_io, rows, cols):          # (Ci, Co) applied per pixel
        w_io = np.asarray(w_io, np.float32)
        Ci, Co = w_io.shape
        out = np.zeros((rows, cols), np.float32)
        for w in range(W):
            out[w * Ci:(w + 1) * Ci, w * Co:(w + 1) * Co] = w_io
        return out

    def tile_bias(b, cols):
        out = np.zeros((1, cols), np.float32)
        t = np.tile(np.asarray(b, np.float32), W)
        out[0, :t.size] = t
        return out

    def fused_banded(ws):
        # [(K,K,C2,C2)] -> (7*W*C2, len(ws)*W*C2): per-row-offset banded blocks
        # with width zero-padding baked in (out-of-range width taps dropped).
        nb = len(ws)
        out = np.zeros((7 * WC2, nb * WC2), np.float32)
        for bi, wk in enumerate(ws):
            wk = np.asarray(wk, np.float32)
            K = wk.shape[0]
            r = K // 2
            for ky in range(K):
                d = ky + (3 - r)                       # row offset in [0, 7)
                for kx in range(K):
                    dx = kx - r
                    for w in range(W):
                        q = w + dx                     # source pixel
                        if 0 <= q < W:
                            out[d * WC2 + q * C2:d * WC2 + (q + 1) * C2,
                                bi * WC2 + w * C2:bi * WC2 + (w + 1) * C2] \
                                = wk[ky, kx]
        return out

    return {
        'w1': jnp.asarray(block_diag(np.asarray(p['w1'])[0, 0], in_lanes, WC2),
                          jnp.float32),
        'b1': jnp.asarray(tile_bias(p['b1'], WC2), jnp.float32),
        'wb': jnp.asarray(fused_banded([p['w21'], p['w22'], p['w23']]),
                          jnp.bfloat16),
        'bb': jnp.asarray(np.concatenate(
            [tile_bias(p['b21'], WC2), tile_bias(p['b22'], WC2),
             tile_bias(p['b23'], WC2)], axis=1), jnp.float32),
        'w3': jnp.asarray(block_diag(np.asarray(p['w3'])[0, 0], WC2, in_lanes),
                          jnp.float32),
        'b3': jnp.asarray(tile_bias(p['b3'], in_lanes), jnp.float32),
        'we': jnp.asarray(block_diag(np.asarray(p['we'])[0, 0], in_lanes,
                                     out_lanes), jnp.float32),
        'be': jnp.asarray(tile_bias(p['be'], out_lanes), jnp.float32),
        'cout': Cout,
        'c2': C2,
    }


# ------------------------------- wrapper -----------------------------------

def drb_pallas(x_nhwc, packed):
    N, H, W, Cin = x_nhwc.shape
    C2 = packed['c2']
    Cout = packed['cout']
    WC2 = W * C2
    in_lanes = packed['w1'].shape[0]
    out_lanes = packed['we'].shape[1]

    # One lane-dense 2-D tile per image: rows = H, lanes = W*Cin padded to a
    # multiple of 128 so every load/store in the kernel is unmasked.
    x2d = x_nhwc.reshape(N * H, W * Cin).astype(jnp.float32)
    if in_lanes > W * Cin:
        x2d = jnp.pad(x2d, ((0, 0), (0, in_lanes - W * Cin)))

    kernel = functools.partial(drb_kernel, H=H, W=W, C2=C2)

    def whole(a):
        nd = a.ndim
        return pl.BlockSpec(a.shape, lambda n, _nd=nd: (0,) * _nd)

    weights = (packed['w1'], packed['b1'], packed['wb'], packed['bb'],
               packed['w3'], packed['b3'], packed['we'], packed['be'])

    out2d = pl.pallas_call(
        kernel,
        out_shape=jax.ShapeDtypeStruct((N * H, out_lanes), jnp.float32),
        grid_spec=pltpu.PrefetchScalarGridSpec(
            num_scalar_prefetch=0,
            grid=(N,),                              # one image per grid step
            in_specs=[pl.BlockSpec((H, in_lanes), lambda n: (n, 0))]
                     + [whole(w) for w in weights],
            out_specs=pl.BlockSpec((H, out_lanes), lambda n: (n, 0)),
            scratch_shapes=[pltpu.VMEM((PAD_TOP + H + 8, WC2), jnp.bfloat16)],
        ),
        compiler_params=pltpu.CompilerParams(
            dimension_semantics=("parallel",)),     # v7x: 2 TCs split the batch
    )(x2d, *weights)

    return out2d[:, :W * Cout].reshape(N, H, W, Cout)


# ---------------- pure-JAX reference for validation ----------------

def _conv_ref(x, w, b, pad):
    y = lax.conv_general_dilated(
        x, w, window_strides=(1, 1), padding=[(pad, pad), (pad, pad)],
        dimension_numbers=('NHWC', 'HWIO', 'NHWC'))
    return y + b


def _sobel_ref(x):
    C = x.shape[-1]

    def dw(f):
        w = jnp.broadcast_to(jnp.asarray(f, jnp.float32)[:, :, None, None],
                             (3, 3, 1, C))
        return lax.conv_general_dilated(
            x, w, window_strides=(1, 1), padding=[(1, 1), (1, 1)],
            dimension_numbers=('NHWC', 'HWIO', 'NHWC'),
            feature_group_count=C)

    return jnp.abs(dw(SOBEL_X)) + jnp.abs(dw(SOBEL_Y))


def drb_reference(x, p):
    out1 = _leaky(_conv_ref(x, p['w1'], p['b1'], 0))
    out21 = _leaky(_conv_ref(out1, p['w21'], p['b21'], 1))
    out22 = _leaky(_conv_ref(out1, p['w22'], p['b22'], 2))
    out23 = _leaky(_conv_ref(out1, p['w23'], p['b23'], 3))
    sob = _sobel_ref(out1)
    out3 = out1 + (out21 + out22 + out23 + sob + sob)
    out4 = _leaky(_conv_ref(out3, p['w3'], p['b3'], 0))
    out5 = jnp.add(x, out4)
    out6 = _leaky(_conv_ref(out5, p['we'], p['be'], 0))
    return out6


if __name__ == "__main__":
    # NOTE: the torch module also builds a `laplacian` submodule that is never
    # used in forward(); it is intentionally omitted here.
    N, Cin, H, W = 2, 4, 16, 16
    Cout = 4
    C2 = 2 * Cin

    keys = jax.random.split(jax.random.PRNGKey(0), 16)
    s = 0.05
    x_nchw = jax.random.normal(keys[0], (N, Cin, H, W), jnp.float32)

    params = {
        'w1':  jax.random.normal(keys[1], (1, 1, Cin, C2), jnp.float32) * s,
        'b1':  jax.random.normal(keys[2], (C2,), jnp.float32) * s,
        'w21': jax.random.normal(keys[3], (3, 3, C2, C2), jnp.float32) * s,
        'b21': jax.random.normal(keys[4], (C2,), jnp.float32) * s,
        'w22': jax.random.normal(keys[5], (5, 5, C2, C2), jnp.float32) * s,
        'b22': jax.random.normal(keys[6], (C2,), jnp.float32) * s,
        'w23': jax.random.normal(keys[7], (7, 7, C2, C2), jnp.float32) * s,
        'b23': jax.random.normal(keys[8], (C2,), jnp.float32) * s,
        'w3':  jax.random.normal(keys[9], (1, 1, C2, Cin), jnp.float32) * s,
        'b3':  jax.random.normal(keys[10], (Cin,), jnp.float32) * s,
        'we':  jax.random.normal(keys[11], (1, 1, Cin, Cout), jnp.float32) * s,
        'be':  jax.random.normal(keys[12], (Cout,), jnp.float32) * s,
    }

    x_nhwc = jnp.transpose(x_nchw, (0, 2, 3, 1))   # NCHW -> NHWC

    in_lanes = _round_up(W * Cin, LANE)
    out_lanes = _round_up(W * Cout, LANE)
    packed = pack_drb_params(params, W, in_lanes, out_lanes)

    out_kernel = jax.block_until_ready(drb_pallas(x_nhwc, packed))

    out_ref = drb_reference(x_nhwc, params)
    np.testing.assert_allclose(np.asarray(out_kernel), np.asarray(out_ref),
                               rtol=1e-2, atol=1e-2)
    print("KERNEL_OK")
</pallas_src>

<mosaic_0001>
module attributes {stable_mosaic.version = 11 : i64} {
  func.func @drb_kernel(%arg0: i32, %arg1: memref<16x128xf32, #tpu.memory_space<vmem>>, %arg2: memref<128x128xf32, #tpu.memory_space<vmem>>, %arg3: memref<1x128xf32, #tpu.memory_space<vmem>>, %arg4: memref<896x384xbf16, #tpu.memory_space<vmem>>, %arg5: memref<1x384xf32, #tpu.memory_space<vmem>>, %arg6: memref<128x128xf32, #tpu.memory_space<vmem>>, %arg7: memref<1x128xf32, #tpu.memory_space<vmem>>, %arg8: memref<128x128xf32, #tpu.memory_space<vmem>>, %arg9: memref<1x128xf32, #tpu.memory_space<vmem>>, %arg10: memref<16x128xf32, #tpu.memory_space<vmem>>, %arg11: memref<40x128xbf16, #tpu.memory_space<vmem>>) attributes {dimension_semantics = [#tpu.dimension_semantics<parallel>], iteration_bounds = array<i64: 2>, scalar_prefetch = 0 : i64, scratch_operands = 1 : i64, tpu.core_type = #tpu.core_type<tc>, window_params = [{transform_indices = @transform_0, window_bounds = array<i64: 16, 128>}, {pipeline_mode = #tpu.pipeline_mode<synchronous>, transform_indices = @transform_1, window_bounds = array<i64: 128, 128>}, {pipeline_mode = #tpu.pipeline_mode<synchronous>, transform_indices = @transform_2, window_bounds = array<i64: 1, 128>}, {pipeline_mode = #tpu.pipeline_mode<synchronous>, transform_indices = @transform_3, window_bounds = array<i64: 896, 384>}, {pipeline_mode = #tpu.pipeline_mode<synchronous>, transform_indices = @transform_4, window_bounds = array<i64: 1, 384>}, {pipeline_mode = #tpu.pipeline_mode<synchronous>, transform_indices = @transform_5, window_bounds = array<i64: 128, 128>}, {pipeline_mode = #tpu.pipeline_mode<synchronous>, transform_indices = @transform_6, window_bounds = array<i64: 1, 128>}, {pipeline_mode = #tpu.pipeline_mode<synchronous>, transform_indices = @transform_7, window_bounds = array<i64: 128, 128>}, {pipeline_mode = #tpu.pipeline_mode<synchronous>, transform_indices = @transform_8, window_bounds = array<i64: 1, 128>}, {transform_indices = @transform_9, window_bounds = array<i64: 16, 128>}]} {
    %c0 = arith.constant 0 : index
    %c0_0 = arith.constant 0 : index
    %0 = vector.load %arg1[%c0, %c0_0] : memref<16x128xf32, #tpu.memory_space<vmem>>, vector<16x128xf32>
    %c0_1 = arith.constant 0 : index
    %c0_2 = arith.constant 0 : index
    %1 = vector.load %arg2[%c0_1, %c0_2] : memref<128x128xf32, #tpu.memory_space<vmem>>, vector<128x128xf32>
    %cst = arith.constant dense<0.000000e+00> : vector<16x128xf32>
    %2 = tpu.matmul %0, %1, %cst {dimension_numbers = #tpu.dot_dimension_numbers<[1], [0], [0], [1], [0, 0, 1, 1], [], []>} : vector<16x128xf32>, vector<128x128xf32>, vector<16x128xf32> -> vector<16x128xf32>
    %c0_3 = arith.constant 0 : index
    %c0_4 = arith.constant 0 : index
    %3 = vector.load %arg3[%c0_3, %c0_4] : memref<1x128xf32, #tpu.memory_space<vmem>>, vector<1x128xf32>
    %4 = vector.broadcast %3 : vector<1x128xf32> to vector<16x128xf32>
    %5 = arith.addf %2, %4 : vector<16x128xf32>
    %cst_5 = arith.constant 0.00999999977 : f32
    %6 = vector.broadcast %cst_5 : f32 to vector<16x128xf32>
    %7 = arith.mulf %6, %5 : vector<16x128xf32>
    %8 = arith.maximumf %5, %7 : vector<16x128xf32>
    %cst_6 = arith.constant 0.000000e+00 : bf16
    %9 = vector.broadcast %cst_6 : bf16 to vector<8x128xbf16>
    %c8 = arith.constant 8 : index
    %c0_7 = arith.constant 0 : index
    %10 = vector.load %arg11[%c8, %c0_7] : memref<40x128xbf16, #tpu.memory_space<vmem>>, vector<8x128xbf16>
    tpu.vector_store %arg11[%c8, %c0_7], %9 {strides = array<i32>} : memref<40x128xbf16, #tpu.memory_space<vmem>>, vector<8x128xbf16>,
    %c32 = arith.constant 32 : index
    %c0_8 = arith.constant 0 : index
    %11 = vector.load %arg11[%c32, %c0_8] : memref<40x128xbf16, #tpu.memory_space<vmem>>, vector<8x128xbf16>
    tpu.vector_store %arg11[%c32, %c0_8], %9 {strides = array<i32>} : memref<40x128xbf16, #tpu.memory_space<vmem>>, vector<8x128xbf16>,
    %12 = arith.truncf %8 : vector<16x128xf32> to vector<16x128xbf16>
    %c16 = arith.constant 16 : index
    %c0_9 = arith.constant 0 : index
    %13 = vector.load %arg11[%c16, %c0_9] : memref<40x128xbf16, #tpu.memory_space<vmem>>, vector<16x128xbf16>
    tpu.vector_store %arg11[%c16, %c0_9], %12 {strides = array<i32>} : memref<40x128xbf16, #tpu.memory_space<vmem>>, vector<16x128xbf16>,
    %c13 = arith.constant 13 : index
    %c0_10 = arith.constant 0 : index
    %14 = vector.load %arg11[%c13, %c0_10] : memref<40x128xbf16, #tpu.memory_space<vmem>>, vector<16x128xbf16>
    %c14 = arith.constant 14 : index
    %c0_11 = arith.constant 0 : index
    %15 = vector.load %arg11[%c14, %c0_11] : memref<40x128xbf16, #tpu.memory_space<vmem>>, vector<16x128xbf16>
    %c15 = arith.constant 15 : index
    %c0_12 = arith.constant 0 : index
    %16 = vector.load %arg11[%c15, %c0_12] : memref<40x128xbf16, #tpu.memory_space<vmem>>, vector<16x128xbf16>
    %c16_13 = arith.constant 16 : index
    %c0_14 = arith.constant 0 : index
    %17 = vector.load %arg11[%c16_13, %c0_14] : memref<40x128xbf16, #tpu.memory_space<vmem>>, vector<16x128xbf16>
    %c17 = arith.constant 17 : index
    %c0_15 = arith.constant 0 : index
    %18 = vector.load %arg11[%c17, %c0_15] : memref<40x128xbf16, #tpu.memory_space<vmem>>, vector<16x128xbf16>
    %c18 = arith.constant 18 : index
    %c0_16 = arith.constant 0 : index
    %19 = vector.load %arg11[%c18, %c0_16] : memref<40x128xbf16, #tpu.memory_space<vmem>>, vector<16x128xbf16>
    %c19 = arith.constant 19 : index
    %c0_17 = arith.constant 0 : index
    %20 = vector.load %arg11[%c19, %c0_17] : memref<40x128xbf16, #tpu.memory_space<vmem>>, vector<16x128xbf16>
    %21 = tpu.concatenate %14, %15, %16, %17, %18, %19, %20 in 1 : vector<16x128xbf16>, vector<16x128xbf16>, vector<16x128xbf16>, vector<16x128xbf16>, vector<16x128xbf16>, vector<16x128xbf16>, vector<16x128xbf16> -> vector<16x896xbf16>
    %c0_18 = arith.constant 0 : index
    %c0_19 = arith.constant 0 : index
    %22 = vector.load %arg4[%c0_18, %c0_19] : memref<896x384xbf16, #tpu.memory_space<vmem>>, vector<896x384xbf16>
    %cst_20 = arith.constant dense<0.000000e+00> : vector<16x384xf32>
    %23 = tpu.matmul %21, %22, %cst_20 {dimension_numbers = #tpu.dot_dimension_numbers<[1], [0], [0], [1], [0, 0, 1, 1], [], []>} : vector<16x896xbf16>, vector<896x384xbf16>, vector<16x384xf32> -> vector<16x384xf32>
    %c0_21 = arith.constant 0 : index
    %c0_22 = arith.constant 0 : index
    %24 = vector.load %arg5[%c0_21, %c0_22] : memref<1x384xf32, #tpu.memory_space<vmem>>, vector<1x384xf32>
    %25 = vector.broadcast %24 : vector<1x384xf32> to vector<16x384xf32>
    %26 = arith.addf %23, %25 : vector<16x384xf32>
    %cst_23 = arith.constant 0.00999999977 : f32
    %27 = vector.broadcast %cst_23 : f32 to vector<16x384xf32>
    %28 = arith.mulf %27, %26 : vector<16x384xf32>
    %29 = arith.maximumf %26, %28 : vector<16x384xf32>
    %30 = vector.extract_strided_slice %29 {offsets = [0, 0], sizes = [16, 128], strides = [1, 1]} : vector<16x384xf32> to vector<16x128xf32>
    %31 = vector.extract_strided_slice %29 {offsets = [0, 128], sizes = [16, 128], strides = [1, 1]} : vector<16x384xf32> to vector<16x128xf32>
    %32 = arith.addf %30, %31 : vector<16x128xf32>
    %33 = vector.extract_strided_slice %29 {offsets = [0, 256], sizes = [16, 128], strides = [1, 1]} : vector<16x384xf32> to vector<16x128xf32>
    %34 = arith.addf %32, %33 : vector<16x128xf32>
    %35 = tpu.iota {dimensions = array<i32: 1>} : vector<16x128xi32>
    %36 = arith.extf %16 : vector<16x128xbf16> to vector<16x128xf32>
    %37 = arith.extf %18 : vector<16x128xbf16> to vector<16x128xf32>
    %c8_i32 = arith.constant 8 : i32
    %38 = vector.broadcast %c8_i32 : i32 to vector<16x128xi32>
    %39 = arith.cmpi sge, %35, %38 : vector<16x128xi32>
    %c8_i32_24 = arith.constant 8 : i32
    %40 = tpu.dynamic_rotate %36 by %c8_i32_24 dim 1 : vector<16x128xf32>, i32 -> vector<16x128xf32>
    %cst_25 = arith.constant 0.000000e+00 : f32
    %41 = vector.broadcast %cst_25 : f32 to vector<16x128xf32>
    %42 = arith.select %39, %40, %41 : vector<16x128xi1>, vector<16x128xf32>
    %c120_i32 = arith.constant 120 : i32
    %43 = vector.broadcast %c120_i32 : i32 to vector<16x128xi32>
    %44 = arith.cmpi slt, %35, %43 : vector<16x128xi32>
    %c120_i32_26 = arith.constant 120 : i32
    %45 = tpu.dynamic_rotate %36 by %c120_i32_26 dim 1 : vector<16x128xf32>, i32 -> vector<16x128xf32>
    %cst_27 = arith.constant 0.000000e+00 : f32
    %46 = vector.broadcast %cst_27 : f32 to vector<16x128xf32>
    %47 = arith.select %44, %45, %46 : vector<16x128xi1>, vector<16x128xf32>
    %c8_i32_28 = arith.constant 8 : i32
    %48 = vector.broadcast %c8_i32_28 : i32 to vector<16x128xi32>
    %49 = arith.cmpi sge, %35, %48 : vector<16x128xi32>
    %c8_i32_29 = arith.constant 8 : i32
    %50 = tpu.dynamic_rotate %8 by %c8_i32_29 dim 1 : vector<16x128xf32>, i32 -> vector<16x128xf32>
    %cst_30 = arith.constant 0.000000e+00 : f32
    %51 = vector.broadcast %cst_30 : f32 to vector<16x128xf32>
    %52 = arith.select %49, %50, %51 : vector<16x128xi1>, vector<16x128xf32>
    %c120_i32_31 = arith.constant 120 : i32
    %53 = vector.broadcast %c120_i32_31 : i32 to vector<16x128xi32>
    %54 = arith.cmpi slt, %35, %53 : vector<16x128xi32>
    %c120_i32_32 = arith.constant 120 : i32
    %55 = tpu.dynamic_rotate %8 by %c120_i32_32 dim 1 : vector<16x128xf32>, i32 -> vector<16x128xf32>
    %cst_33 = arith.constant 0.000000e+00 : f32
    %56 = vector.broadcast %cst_33 : f32 to vector<16x128xf32>
    %57 = arith.select %54, %55, %56 : vector<16x128xi1>, vector<16x128xf32>
    %c8_i32_34 = arith.constant 8 : i32
    %58 = vector.broadcast %c8_i32_34 : i32 to vector<16x128xi32>
    %59 = arith.cmpi sge, %35, %58 : vector<16x128xi32>
    %c8_i32_35 = arith.constant 8 : i32
    %60 = tpu.dynamic_rotate %37 by %c8_i32_35 dim 1 : vector<16x128xf32>, i32 -> vector<16x128xf32>
    %cst_36 = arith.constant 0.000000e+00 : f32
    %61 = vector.broadcast %cst_36 : f32 to vector<16x128xf32>
    %62 = arith.select %59, %60, %61 : vector<16x128xi1>, vector<16x128xf32>
    %c120_i32_37 = arith.constant 120 : i32
    %63 = vector.broadcast %c120_i32_37 : i32 to vector<16x128xi32>
    %64 = arith.cmpi slt, %35, %63 : vector<16x128xi32>
    %c120_i32_38 = arith.constant 120 : i32
    %65 = tpu.dynamic_rotate %37 by %c120_i32_38 dim 1 : vector<16x128xf32>, i32 -> vector<16x128xf32>
    %cst_39 = arith.constant 0.000000e+00 : f32
    %66 = vector.broadcast %cst_39 : f32 to vector<16x128xf32>
    %67 = arith.select %64, %65, %66 : vector<16x128xi1>, vector<16x128xf32>
    %68 = arith.subf %42, %47 : vector<16x128xf32>
    %69 = arith.subf %52, %57 : vector<16x128xf32>
    %cst_40 = arith.constant 2.000000e+00 : f32
    %70 = vector.broadcast %cst_40 : f32 to vector<16x128xf32>
    %71 = arith.mulf %70, %69 : vector<16x128xf32>
    %72 = arith.addf %68, %71 : vector<16x128xf32>
    %73 = arith.subf %62, %67 : vector<16x128xf32>
    %74 = arith.addf %72, %73 : vector<16x128xf32>
    %cst_41 = arith.constant 2.000000e+00 : f32
    %75 = vector.broadcast %cst_41 : f32 to vector<16x128xf32>
    %76 = arith.mulf %75, %36 : vector<16x128xf32>
    %77 = arith.addf %42, %76 : vector<16x128xf32>
    %78 = arith.addf %77, %47 : vector<16x128xf32>
    %cst_42 = arith.constant 2.000000e+00 : f32
    %79 = vector.broadcast %cst_42 : f32 to vector<16x128xf32>
    %80 = arith.mulf %79, %37 : vector<16x128xf32>
    %81 = arith.addf %62, %80 : vector<16x128xf32>
    %82 = arith.addf %81, %67 : vector<16x128xf32>
    %83 = arith.subf %78, %82 : vector<16x128xf32>
    %84 = math.absf %74 : vector<16x128xf32>
    %85 = math.absf %83 : vector<16x128xf32>
    %86 = arith.addf %84, %85 : vector<16x128xf32>
    %87 = arith.addf %8, %34 : vector<16x128xf32>
    %cst_43 = arith.constant 2.000000e+00 : f32
    %88 = vector.broadcast %cst_43 : f32 to vector<16x128xf32>
    %89 = arith.mulf %88, %86 : vector<16x128xf32>
    %90 = arith.addf %87, %89 : vector<16x128xf32>
    %c0_44 = arith.constant 0 : index
    %c0_45 = arith.constant 0 : index
    %91 = vector.load %arg6[%c0_44, %c0_45] : memref<128x128xf32, #tpu.memory_space<vmem>>, vector<128x128xf32>
    %cst_46 = arith.constant dense<0.000000e+00> : vector<16x128xf32>
    %92 = tpu.matmul %90, %91, %cst_46 {dimension_numbers = #tpu.dot_dimension_numbers<[1], [0], [0], [1], [0, 0, 1, 1], [], []>} : vector<16x128xf32>, vector<128x128xf32>, vector<16x128xf32> -> vector<16x128xf32>
    %c0_47 = arith.constant 0 : index
    %c0_48 = arith.constant 0 : index
    %93 = vector.load %arg7[%c0_47, %c0_48] : memref<1x128xf32, #tpu.memory_space<vmem>>, vector<1x128xf32>
    %94 = vector.broadcast %93 : vector<1x128xf32> to vector<16x128xf32>
    %95 = arith.addf %92, %94 : vector<16x128xf32>
    %cst_49 = arith.constant 0.00999999977 : f32
    %96 = vector.broadcast %cst_49 : f32 to vector<16x128xf32>
    %97 = arith.mulf %96, %95 : vector<16x128xf32>
    %98 = arith.maximumf %95, %97 : vector<16x128xf32>
    %c0_50 = arith.constant 0 : index
    %c0_51 = arith.constant 0 : index
    %99 = vector.load %arg1[%c0_50, %c0_51] : memref<16x128xf32, #tpu.memory_space<vmem>>, vector<16x128xf32>
    %100 = arith.addf %99, %98 : vector<16x128xf32>
    %c0_52 = arith.constant 0 : index
    %c0_53 = arith.constant 0 : index
    %101 = vector.load %arg8[%c0_52, %c0_53] : memref<128x128xf32, #tpu.memory_space<vmem>>, vector<128x128xf32>
    %cst_54 = arith.constant dense<0.000000e+00> : vector<16x128xf32>
    %102 = tpu.matmul %100, %101, %cst_54 {dimension_numbers = #tpu.dot_dimension_numbers<[1], [0], [0], [1], [0, 0, 1, 1], [], []>} : vector<16x128xf32>, vector<128x128xf32>, vector<16x128xf32> -> vector<16x128xf32>
    %c0_55 = arith.constant 0 : index
    %c0_56 = arith.constant 0 : index
    %103 = vector.load %arg9[%c0_55, %c0_56] : memref<1x128xf32, #tpu.memory_space<vmem>>, vector<1x128xf32>
    %104 = vector.broadcast %103 : vector<1x128xf32> to vector<16x128xf32>
    %105 = arith.addf %102, %104 : vector<16x128xf32>
    %cst_57 = arith.constant 0.00999999977 : f32
    %106 = vector.broadcast %cst_57 : f32 to vector<16x128xf32>
    %107 = arith.mulf %106, %105 : vector<16x128xf32>
    %108 = arith.maximumf %105, %107 : vector<16x128xf32>
    %c0_58 = arith.constant 0 : index
    %c0_59 = arith.constant 0 : index
    %109 = vector.load %arg10[%c0_58, %c0_59] : memref<16x128xf32, #tpu.memory_space<vmem>>, vector<16x128xf32>
    tpu.vector_store %arg10[%c0_58, %c0_59], %108 {strides = array<i32>} : memref<16x128xf32, #tpu.memory_space<vmem>>, vector<16x128xf32>,
    return
  }
  func.func @transform_0(%arg0: i32) -> (i32, i32) {
    %c0_i32 = arith.constant 0 : i32
    %c0_i32_0 = arith.constant 0 : i32
    return %arg0, %c0_i32 : i32, i32
  }
  func.func @transform_1(%arg0: i32) -> (i32, i32) {
    %c0_i32 = arith.constant 0 : i32
    %c0_i32_0 = arith.constant 0 : i32
    %c0_i32_1 = arith.constant 0 : i32
    return %c0_i32, %c0_i32_0 : i32, i32
  }
  func.func @transform_2(%arg0: i32) -> (i32, i32) {
    %c0_i32 = arith.constant 0 : i32
    %c0_i32_0 = arith.constant 0 : i32
    %c0_i32_1 = arith.constant 0 : i32
    return %c0_i32, %c0_i32_0 : i32, i32
  }
  func.func @transform_3(%arg0: i32) -> (i32, i32) {
    %c0_i32 = arith.constant 0 : i32
    %c0_i32_0 = arith.constant 0 : i32
    %c0_i32_1 = arith.constant 0 : i32
    return %c0_i32, %c0_i32_0 : i32, i32
  }
  func.func @transform_4(%arg0: i32) -> (i32, i32) {
    %c0_i32 = arith.constant 0 : i32
    %c0_i32_0 = arith.constant 0 : i32
    %c0_i32_1 = arith.constant 0 : i32
    return %c0_i32, %c0_i32_0 : i32, i32
  }
  func.func @transform_5(%arg0: i32) -> (i32, i32) {
    %c0_i32 = arith.constant 0 : i32
    %c0_i32_0 = arith.constant 0 : i32
    %c0_i32_1 = arith.constant 0 : i32
    return %c0_i32, %c0_i32_0 : i32, i32
  }
  func.func @transform_6(%arg0: i32) -> (i32, i32) {
    %c0_i32 = arith.constant 0 : i32
    %c0_i32_0 = arith.constant 0 : i32
    %c0_i32_1 = arith.constant 0 : i32
    return %c0_i32, %c0_i32_0 : i32, i32
  }
  func.func @transform_7(%arg0: i32) -> (i32, i32) {
    %c0_i32 = arith.constant 0 : i32
    %c0_i32_0 = arith.constant 0 : i32
    %c0_i32_1 = arith.constant 0 : i32
    return %c0_i32, %c0_i32_0 : i32, i32
  }
  func.func @transform_8(%arg0: i32) -> (i32, i32) {
    %c0_i32 = arith.constant 0 : i32
    %c0_i32_0 = arith.constant 0 : i32
    %c0_i32_1 = arith.constant 0 : i32
    return %c0_i32, %c0_i32_0 : i32, i32
  }
  func.func @transform_9(%arg0: i32) -> (i32, i32) {
    %c0_i32 = arith.constant 0 : i32
    %c0_i32_0 = arith.constant 0 : i32
    return %arg0, %c0_i32 : i32, i32
  }
}

</mosaic_0001>

<bundles_post_ra>
// kernel: tpu_custom_call.1
= control target key start
LH: loop header
LB: loop body
LE: loop exit
PB: predicated region body
PF: predicated region fallthrough
CT: control target
= control target key end

     0   :  { %s4463_s0 = inlined_call_operand.hbm [shape: f32[32,128], index: 0, kind: input, shape index: {}]   ;;  %s4464_s1 = inlined_call_operand.hbm [shape: f32[128,128], index: 1, kind: input, shape index: {}]   ;;  %s4465_s2 = inlined_call_operand.vmem [shape: f32[1,128], index: 2, kind: input, shape index: {}]   ;;  %s4466_s3 = inlined_call_operand.hbm [shape: bf16[896,384], index: 3, kind: input, shape index: {}]   ;;  %s4467_s4 = inlined_call_operand.vmem [shape: f32[1,384], index: 4, kind: input, shape index: {}]   ;;  %s4468_s5 = inlined_call_operand.hbm [shape: f32[128,128], index: 5, kind: input, shape index: {}]   ;;  %s4469_s6 = inlined_call_operand.vmem [shape: f32[1,128], index: 6, kind: input, shape index: {}]   ;;  %s4470_s7 = inlined_call_operand.hbm [shape: f32[128,128], index: 7, kind: input, shape index: {}]   ;;  %s4471_s8 = inlined_call_operand.vmem [shape: f32[1,128], index: 8, kind: input, shape index: {}]   ;;  %s4472_s9 = inlined_call_operand.hbm [shape: f32[32,128], index: 9, kind: output, shape index: {}]  }
   0x1   :  { %4483 = sst [smem:[#allocation19_spill]] %s4472_s9 }
   0x2   :  { %14 = vsyncpa [#allocation4], 0 }
   0x3   :  { %16 = vsyncpa [#allocation4 + $0x1], 0 }
   0x4   :  { %17 = vsyncpa [#allocation7], 0 }
   0x5   :  { %18 = vsyncpa [#allocation10], 0 }
   0x6   :  { %19 = vsyncpa [#allocation5], 0 }
   0x7   :  { %21 = vsyncpa [#allocation5 + $0x1], 0  ;;  %s3901_s30 = smov 0   ;;  %s3903_s10 = smov 0  }
   0x8   :  { %s3905_s11 = smov 0   ;;  %s3907_s12 = smov 0  }
   0x9 LB: > { %4484 = sst [smem:[#allocation17_spill]] %s3821_s30  ;;  %s3922_s13 = sadd.s32 4294967295, %s3833_s12   ;;  %s3833_s12 = sphi %s3907_s12, %s4510_s12   ;;  %s3829_s11 = sphi %s3905_s11, %s4509_s11   ;;  %s3825_s10 = sphi %s3903_s10, %s4508_s10   ;;  %s3821_s30 = sphi %s3901_s30, %s4507_s30  }
   0xa   : > { %s2687_s14 = sadd.s32 4294967294, %s3833_s12   ;;  %p47_p0 = scmp.ne.s32.totalorder %s3825_s10, %s3821_s30 }
   0xb   : > { %p4473_p1 = scmp.eq.s32.totalorder %s3922_s13, 0  ;;  %p245_p3 = scmp.eq.s32.totalorder %s2687_s14, 1 }
   0xc   : > { %p2688_p5 = scmp.ge.s32.totalorder %s3833_s12, 1  ;;  %p252_p7 = scmp.lt.s32.totalorder %s3833_s12, 3 }
   0xd   : > { %p3931_p4 = por %p4473_p1, %p47_p0  ;;  %p3936_p6 = por %p245_p3, %p47_p0 }
   0xe   : > { %p3941_p8 = pnand %p2688_p5, %p252_p7  ;;  %s3835_s18 = smov [#allocation6]  }
   0xf   : > { %s4485_s15 = scalar_select %p3931_p4, 1, 0 }
  0x10   : > { %s4486_s16 = scalar_select %p3936_p6, 1, 0 }
  0x11   : > { %s4488_s17 = scalar_select %p3941_p8, 1, 0 }
  0x12   : > { %4487 = sst [smem:[#allocation18_spill]] %s4486_s16  ;;  %s264_s19 = sshll.u32 %s3835_s18, 4  ;;  %s3945_s19 = int_to_ptr.vmem [resolvable:$true] %s264_s19 }
  0x13   : > { %p3287_p9 = pneg %p3941_p8  ;;  %s3836_s21 = smov [#allocation9]  }
  0x14   : > { %s296_s22 = sshll.u32 %s3836_s21, 4  ;;  %s3837_s23 = smov [#allocation8]   ;;  %s3956_s22 = int_to_ptr.vmem [resolvable:$true] %s296_s22 }
  0x15   : > { %p3952_p11 = pnand %p3287_p9, %p4473_p1  ;;  %s3958_s24 = sshll.u32 %s3837_s23, 4  ;;  %s281_s24 = int_to_ptr.vmem [resolvable:$true] %s3958_s24 }
  0x16   : > { %s3617_s27 = scalar_lea.hbm %s4464_s1, 2048 }
  0x17   : > { %p3618_p12 = scmp.ne.s32.totalorder %s4464_s1, %s3617_s27  ;;  %p3968_p13 = pneg %p3952_p11 }
  0x18   : > { %p3624_p5 = scmp.lt.u32.totalorder %s3617_s27, %s4464_s1 }
  0x19   : > { %p3620_p0 = pnand %p3968_p13, %p3618_p12 }
  0x1b   : > { %p3621_p3 = pneg %p3620_p0 }
  0x1d   : > { %p3626_p7 = pnand %p3624_p5, %p3621_p3 }
  0x1f   : > { %3629 = shalt.err (!%p3626_p7)
}
  0x20   : > { %s3630_s23 = scalar_lea.vmem %s3945_s19, 2048  ;;  %p3638_p2 = scmp.lt.s32.totalorder %s3945_s19, %s3945_s19 }
  0x21   : > { %p3631_p9 = scmp.ne.s32.totalorder %s3945_s19, %s3630_s23  ;;  %p3639_p6 = scmp.lt.s32.totalorder %s3630_s23, %s3630_s23 }
  0x23   : > { %p3633_p10 = pnand %p3631_p9, %p3968_p13  ;;  %p3640_p12 = por %p3639_p6, %p3638_p2 }
  0x25   : > { %p3634_p1 = pneg %p3633_p10 }
  0x27   : > { %p3641_p0 = pnand %p3640_p12, %p3634_p1 }
  0x29   : > { %3644 = shalt.err (!%p3641_p0)
}
  0x2a   : > { %s4479_s25 = smov 128   ;;  %s4481_s26 = smov 8  }
  0x2b   : > { %3290 = dma.hbm_to_vmem [thread:$0]  (!%p3952_p11), %s4464_s1, 2048, %s3945_s19, [#allocation7], %s4479_s25, %s4479_s25, %s4481_s26  }
  0x2c   : > { %s3645_s21 = scalar_lea.hbm %s4468_s5, 2048 }
  0x2d   : > { %p3646_p1 = scmp.ne.s32.totalorder %s4468_s5, %s3645_s21  ;;  %p3652_p10 = scmp.lt.u32.totalorder %s3645_s21, %s4468_s5 }
  0x2f   : > { %p3648_p2 = pnand %p3646_p1, %p3968_p13 }
  0x31   : > { %p3649_p6 = pneg %p3648_p2 }
  0x33   : > { %p3654_p3 = pnand %p3652_p10, %p3649_p6 }
  0x35   : > { %3657 = shalt.err (!%p3654_p3)
}
  0x36   : > { %s3658_s19 = scalar_lea.vmem %s3956_s22, 2048  ;;  %p3666_p12 = scmp.lt.s32.totalorder %s3956_s22, %s3956_s22 }
  0x37   : > { %p3659_p5 = scmp.ne.s32.totalorder %s3956_s22, %s3658_s19  ;;  %p3667_p0 = scmp.lt.s32.totalorder %s3658_s19, %s3658_s19 }
  0x39   : > { %p3661_p7 = pnand %p3659_p5, %p3968_p13  ;;  %p3668_p1 = por %p3667_p0, %p3666_p12 }
  0x3b   : > { %p3662_p9 = pneg %p3661_p7 }
  0x3d   : > { %p3669_p2 = pnand %p3668_p1, %p3662_p9 }
  0x3f   : > { %3672 = shalt.err (!%p3669_p2)
}
  0x40   : > { %3296 = dma.hbm_to_vmem [thread:$0]  (!%p3952_p11), %s4468_s5, 2048, %s3956_s22, [#allocation10], %s4479_s25, %s4479_s25, %s4481_s26  }
  0x41   : > { %s3673_s28 = scalar_lea.hbm %s4466_s3, 21504 }
  0x42   : > { %p3674_p6 = scmp.ne.s32.totalorder %s4466_s3, %s3673_s28  ;;  %p3680_p5 = scmp.lt.u32.totalorder %s3673_s28, %s4466_s3 }
  0x44   : > { %p3676_p10 = pnand %p3674_p6, %p3968_p13 }
  0x46   : > { %p3677_p3 = pneg %p3676_p10 }
  0x48   : > { %p3682_p7 = pnand %p3680_p5, %p3677_p3 }
  0x4a   : > { %3685 = shalt.err (!%p3682_p7)
}
  0x4b   : > { %s3686_s19 = scalar_lea.vmem %s281_s24, 21504  ;;  %p3694_p1 = scmp.lt.s32.totalorder %s281_s24, %s281_s24 }
  0x4c   : > { %p3687_p9 = scmp.ne.s32.totalorder %s281_s24, %s3686_s19  ;;  %p3695_p2 = scmp.lt.s32.totalorder %s3686_s19, %s3686_s19 }
  0x4e   : > { %p3689_p12 = pnand %p3687_p9, %p3968_p13  ;;  %p3696_p4 = por %p3695_p2, %p3694_p1 }
  0x50   : > { %p3690_p0 = pneg %p3689_p12 }
  0x52   : > { %p3697_p8 = pnand %p3696_p4, %p3690_p0 }
  0x54   : > { %3700 = shalt.err (!%p3697_p8)
}
  0x55   : > { %s3840_s22 = smov 192   ;;  %s3841_s9 = smov 12  }
  0x56   : > { %3293 = dma.hbm_to_vmem [thread:$0]  (!%p3952_p11), %s4466_s3, 21504, %s281_s24, [#allocation7], %s3840_s22, %s3840_s22, %s3841_s9  }
  0x57   : > { %s3842_s27 = smov [#allocation11]   ;;  %s3701_s21 = scalar_lea.hbm %s4470_s7, 2048 }
  0x58   : > { %s312_s28 = sshll.u32 %s3842_s27, 4  ;;  %p3702_p4 = scmp.ne.s32.totalorder %s4470_s7, %s3701_s21  ;;  %s313_s28 = int_to_ptr.vmem [resolvable:$true] %s312_s28 }
  0x59   : > { %p3708_p10 = scmp.lt.u32.totalorder %s3701_s21, %s4470_s7 }
  0x5a   : > { %p3704_p8 = pnand %p3702_p4, %p3968_p13 }
  0x5c   : > { %p3705_p6 = pneg %p3704_p8 }
  0x5e   : > { %p3710_p3 = pnand %p3708_p10, %p3705_p6 }
  0x60   : > { %3713 = shalt.err (!%p3710_p3)
}
  0x61   : > { %s3714_s24 = scalar_lea.vmem %s313_s28, 2048  ;;  %p3722_p12 = scmp.lt.s32.totalorder %s313_s28, %s313_s28 }
  0x62   : > { %p3715_p5 = scmp.ne.s32.totalorder %s313_s28, %s3714_s24  ;;  %p3723_p0 = scmp.lt.s32.totalorder %s3714_s24, %s3714_s24 }
  0x64   : > { %p3717_p7 = pnand %p3715_p5, %p3968_p13  ;;  %p3724_p1 = por %p3723_p0, %p3722_p12 }
  0x66   : > { %p3718_p9 = pneg %p3717_p7 }
  0x68   : > { %p3725_p2 = pnand %p3724_p1, %p3718_p9 }
  0x6a   : > { %3728 = shalt.err (!%p3725_p2)
}
  0x6b   : > { %s4491_s22 = smov 8   ;;  %s4492_s9 = smov 128  }
  0x6c   : > { %3299 = dma.hbm_to_vmem [thread:$0]  (!%p3952_p11), %s4470_s7, 2048, %s313_s28, [#allocation10], %s4492_s9, %s4492_s9, %s4491_s22  }
  0x6d   : > { %s4059_s14 = sadd.s32 1, %s3833_s12   ;;  %s34_s20 = sadd.s32 1, %s3829_s11 }
  0x6e   : > { %s31_s30 = ssub.s32 %s3833_s12, %s4059_s14  ;;  %p41_p13 = scmp.ne.s32.totalorder %s3829_s11, %s3825_s10 }
  0x6f   : > { %p32_p4 = scmp.eq.s32.totalorder %s31_s30, 0  ;;  %p42_p8 = scmp.eq.s32.totalorder %s3833_s12, 0 }
  0x70   : > { %p4493_p6 = scmp.eq.s32.totalorder %s3922_s13, 1  ;;  %p3312_p3 = scmp.lt.s32.totalorder %s3833_s12, 2 }
  0x71   : > { %s4075_s27 = scalar_select %p32_p4, %s3829_s11, %s34_s20  }
  0x72   : > { %p4069_p10 = por %p4493_p6, %p41_p13  ;;  %p43_p5 = por %p42_p8, %p41_p13 }
  0x73   : > { %s329_s29 = sand.u32 1, %s3829_s11   ;;  %s2891_s28 = sshll.u32 %s3833_s12, 8 }
  0x74   : > { %s2694_s18 = sshll.u32 %s329_s29, 4  ;;  %s4082_s19 = scalar_lea.hbm %s4463_s0, %s2891_s28 }
  0x75   : > { %s333_s24 = scalar_lea.vmem [#allocation3], %s2694_s18  ;;  %p4086_p11 = pnand %p3312_p3, %p43_p5 }
  0x76   : > { %s340_s25 = sshll.u32 %s333_s24, 4  ;;  %s4090_s20 = scalar_lea.sflag [#allocation4], %s329_s29  ;;  %s4084_s25 = int_to_ptr.vmem [resolvable:$true] %s340_s25 }
  0x77   : > { %s3729_s30 = scalar_lea.hbm %s4082_s19, 256  ;;  %p3731_p9 = pneg %p4086_p11 }
  0x78   : > { %p3730_p7 = scmp.ne.s32.totalorder %s4082_s19, %s3729_s30  ;;  %s3734_s21 = scalar_lea.hbm %s4463_s0, 512 }
  0x79   : > { %p3735_p1 = scmp.lt.u32.totalorder %s4082_s19, %s4463_s0  ;;  %p3736_p2 = scmp.lt.u32.totalorder %s3734_s21, %s3729_s30 }
  0x7a   : > { %p3732_p12 = pnand %p3731_p9, %p3730_p7  ;;  %p3738_p4 = scmp.lt.u32.totalorder %s3729_s30, %s4082_s19 }
  0x7b   : > { %p3737_p13 = por %p3736_p2, %p3735_p1 }
  0x7c   : > { %p3733_p0 = pneg %p3732_p12 }
  0x7d   : > { %p3739_p8 = por %p3738_p4, %p3737_p13 }
  0x7f   : > { %p3740_p6 = pnand %p3739_p8, %p3733_p0 }
  0x81   : > { %3743 = shalt.err (!%p3740_p6)
}
  0x82   : > { %s3744_s29 = scalar_lea.vmem %s4084_s25, 256  ;;  %s3843_s18 = smov [#allocation3]  }
  0x83   : > { %p3745_p3 = scmp.ne.s32.totalorder %s4084_s25, %s3744_s29  ;;  %s3749_s28 = sshll.u32 %s3843_s18, 4  ;;  %s3750_s28 = int_to_ptr.vmem [resolvable:$false] %s3749_s28 }
  0x84   : > { %s3751_s23 = scalar_lea.vmem %s3750_s28, 512  ;;  %p3752_p12 = scmp.lt.s32.totalorder %s4084_s25, %s3750_s28 }
  0x85   : > { %p3747_p5 = pnand %p3745_p3, %p3731_p9  ;;  %p3753_p1 = scmp.lt.s32.totalorder %s3751_s23, %s3744_s29 }
  0x87   : > { %p3748_p7 = pneg %p3747_p5  ;;  %p3754_p2 = por %p3753_p1, %p3752_p12 }
  0x89   : > { %p3755_p13 = pnand %p3754_p2, %p3748_p7 }
  0x8b   : > { %3758 = shalt.err (!%p3755_p13)
}
  0x8c   : > { %3303 = dma.hbm_to_vmem [thread:$0]  (!%p4086_p11), %s4082_s19, 256, %s4084_s25, %s4090_s20, %s4492_s9, %s4492_s9, %s4491_s22  }
  0x8d   : > { %p4496_p9 = scmp.ne.s32.totalorder %s4488_s17, 0 }
  0x8e   : > { %s4124_s30 = sand.u32 (!%p4496_p9), 1, %s3825_s10   ;;  %p4497_p0 = scmp.ne.s32.totalorder (!%p4496_p9), %s4485_s15, 0 }
  0x8f   : > { %352 = sbr.rel (%p4496_p9) target bundleno = 1285 (0x505), region = 56  ;;  %s2698_s21 = sshll.u32 (!%p4496_p9), %s4124_s30, 4 }
  0x90   : > { %s355_s24 = scalar_lea.sflag (!%p4496_p9), [#allocation4], %s4124_s30  ;;  %s4130_s26 = scalar_lea.vmem (!%p4496_p9), [#allocation3], %s2698_s21 }
  0x96   : > { %3804 = dma.done.wait (%p4497_p0), %s355_s24, 256  }
  0x97   : > { %3806 = vsyncadd (%p4497_p0), %s355_s24, 4294967040  ;;  %p4498_p11 = scmp.eq.s32.totalorder %s3922_s13, 0 }
  0x99   : > { %3808 = dma.done.wait (%p4498_p11), [#allocation7], 23552   ;;  %p4499_p4 = pmov %p4498_p11 }
  0x9b   : > { %3810 = vsyncadd (%p4499_p4), [#allocation7], 4294943744  ;;  %p4500_p8 = pmov %p4499_p4 }
  0x9c   : > { %p4501_p6 = pmov %p4499_p4 }
  0x9d   : > { %3812 = dma.done.wait (%p4500_p8), [#allocation10], 4096  }
  0x9e   : > { %3814 = vsyncadd (%p4501_p6), [#allocation10], 4294963200  ;;  %v414_v0 = vld [vmem:[#allocation6] sm:$0xff]  ;;  %v415_v1 = vld [vmem:[#allocation6 + $0x8] sm:$0xff]  ;;  %v3844_v54 = vmov 0   ;;  %s3845_s22 = smov 8  }
  0x9f   : > { %v416_v2 = vld [vmem:[#allocation6 + $0x10] sm:$0xff]  ;;  %v3155_v3 = vpack.c.bf16 %v415_v1, %v414_v0  ;;  %v417_v4 = vld [vmem:[#allocation6 + $0x18] sm:$0xff]  ;;  %v418_v6 = vld [vmem:[#allocation6 + $0x20] sm:$0xff]  ;;  %516 = vst [vmem:[#allocation2 + $0x4] sm:$0xf] %v3844_v54  ;;  %s3846_s9 = smov 120  }
  0xa0   : > { %v3159_v5 = vpack.c.bf16 %v417_v4, %v416_v2  ;;  %v419_v7 = vld [vmem:[#allocation6 + $0x28] sm:$0xff]  ;;  %v420_v9 = vld [vmem:[#allocation6 + $0x30] sm:$0xff]  ;;  %v421_v10 = vld [vmem:[#allocation6 + $0x38] sm:$0xff]  ;;  %517 = vst [vmem:[#allocation2 + $0x10] sm:$0xf] %v3844_v54  ;;  %vm617_vm0 = vcmask 1040384  }
  0xa1   : > { %3156 = vmatprep.subr.bf16.mxu0 %v3155_v3  ;;  %v3163_v8 = vpack.c.bf16 %v419_v7, %v418_v6  ;;  %v412_v11 = vld [vmem:[%s4130_s26] sm:$0xff]  ;;  %v3387_v15 = vld [vmem:[#allocation8 + $0x1c] ss:$12 sps:$4 sm:$0xff]   ;;  %v3167_v16 = vpack.c.bf16 %v421_v10, %v420_v9  ;;  %v3393_v24 = vld [vmem:[#allocation8 + $0x4c] ss:$12 sps:$4 sm:$0xff]   ;;  %vm568_vm1 = vcmask 1046528  }
  0xa2   : > { %3158 = vmatpush3.bf16.msra.mxu0 %v3155_v3  ;;  %3062 = vmatprep.mubr.f32.mxu0 %v412_v11  ;;  %v3384_v12 = vld [vmem:[#allocation8 + $0x4] ss:$12 sps:$4 sm:$0xff]   ;;  %v3386_v13 = vld [vmem:[#allocation8] ss:$12 sps:$4 sm:$0xff]   ;;  %v425_v22 = vld [vmem:[#allocation6 + $0x58] sm:$0xff]  ;;  %vm589_vm4 = vcmask 1041408  }
  0xa3   : > { %3160 = vmatprep.subr.bf16.mxu0 %v3159_v5  ;;  %v422_v14 = vld [vmem:[#allocation6 + $0x40] sm:$0xff]  ;;  %1872 = vmatprep.subr.bf16.mxu1 %v3384_v12  ;;  %v423_v17 = vld [vmem:[#allocation6 + $0x48] sm:$0xff]  ;;  %v424_v20 = vld [vmem:[#allocation6 + $0x50] sm:$0xff]  ;;  %vm549_vm2 = vsmask.f32 7424  ;;  %vm3848_vm6 = vmmov 0  }
  0xa4   : > { %1873 = vmatpush1.bf16.msra.mxu1 %v3386_v13  ;;  %v3389_v18 = vld [vmem:[#allocation8 + $0x18] ss:$12 sps:$4 sm:$0xff]   ;;  %v3390_v19 = vld [vmem:[#allocation8 + $0x34] ss:$12 sps:$4 sm:$0xff]   ;;  %v3171_v21 = vpack.c.bf16 %v423_v17, %v422_v14  ;;  %v3392_v23 = vld [vmem:[#allocation8 + $0x30] ss:$12 sps:$4 sm:$0xff]   ;;  %v3175_v29 = vpack.c.bf16 %v425_v22, %v424_v20 }
  0xa5   : > { %1874 = vmatprep.subr.bf16.mxu1 %v3387_v15  ;;  %v426_v25 = vld [vmem:[#allocation6 + $0x60] sm:$0xff]  ;;  %v427_v26 = vld [vmem:[#allocation6 + $0x68] sm:$0xff]  ;;  %v428_v31 = vld [vmem:[#allocation6 + $0x70] sm:$0xff]  ;;  %vm862_vm3 = vsmask.f32 5376  ;;  %s408_s23 = scalar_lea.vmem [#allocation12], %s2698_s21 }
  0xa6   : > { %3162 = vmatpush3.bf16.msra.mxu0 %v3159_v5  ;;  %v3395_v27 = vld [vmem:[#allocation8 + $0x48] ss:$12 sps:$4 sm:$0xff]   ;;  %v3396_v28 = vld [vmem:[#allocation8 + $0x64] ss:$12 sps:$4 sm:$0xff]   ;;  %v3398_v30 = vld [vmem:[#allocation8 + $0x60] ss:$12 sps:$4 sm:$0xff]   ;;  %v3179_v34 = vpack.c.bf16 %v427_v26, %v426_v25 }
  0xa7   : > { %3164 = vmatprep.subr.bf16.mxu0 %v3163_v8  ;;  %v429_v32 = vld [vmem:[#allocation6 + $0x78] sm:$0xff]  ;;  %v3402_v36 = vld [vmem:[#allocation8 + $0x94] ss:$12 sps:$4 sm:$0xff]   ;;  %v3408_v42 = vld [vmem:[#allocation8 + $0xc4] ss:$12 sps:$4 sm:$0xff]   ;;  %s2576_s24 = sshll.u32 %s408_s23, 4  ;;  %s4413_s24 = int_to_ptr.vmem [resolvable:$true] %s2576_s24 }
  0xa8   : > { %1875 = vmatpush1.bf16.msra.mxu1 %v3389_v18  ;;  %v3399_v33 = vld [vmem:[#allocation8 + $0x7c] ss:$12 sps:$4 sm:$0xff]   ;;  %v3401_v35 = vld [vmem:[#allocation8 + $0x78] ss:$12 sps:$4 sm:$0xff]   ;;  %v3183_v37 = vpack.c.bf16 %v429_v32, %v428_v31  ;;  %v3411_v44 = vld [vmem:[#allocation8 + $0xc0] ss:$12 sps:$4 sm:$0xff]  }
  0xa9   : > { %1876 = vmatprep.subr.bf16.mxu1 %v3390_v19  ;;  %v3404_v38 = vld [vmem:[#allocation8 + $0x90] ss:$12 sps:$4 sm:$0xff]   ;;  %v3405_v39 = vld [vmem:[#allocation8 + $0xac] ss:$12 sps:$4 sm:$0xff]   ;;  %v3407_v41 = vld [vmem:[#allocation8 + $0xa8] ss:$12 sps:$4 sm:$0xff]  }
  0xaa   : > { %3166 = vmatpush3.bf16.msra.mxu0 %v3163_v8  ;;  %v413_v40 = vld [vmem:[%s4130_s26 + $0x8] sm:$0xff]  ;;  %v3418_v50 = vld [vmem:[#allocation8 + $0xf4] ss:$12 sps:$4 sm:$0xff]   ;;  %v3428_v59 = vld [vmem:[#allocation8 + $0x124] ss:$12 sps:$4 sm:$0xff]   ;;  %s2563_s21 = scalar_lea.sflag [#allocation5], %s4124_s30 }
  0xab   : > { %3168 = vmatprep.subr.bf16.mxu0 %v3167_v16  ;;  %v3410_v43 = vld [vmem:[#allocation8 + $0xc8] ss:$12 sps:$4 sm:$0xff]   ;;  %v3415_v47 = vld [vmem:[#allocation8 + $0xe0] ss:$12 sps:$4 sm:$0xff]   ;;  %v3416_v48 = vld [vmem:[#allocation8 + $0xd8] ss:$12 sps:$4 sm:$0xff]  }
  0xac   : > { %1877 = vmatpush1.bf16.msra.mxu1 %v3392_v23  ;;  %v3412_v45 = vld [vmem:[#allocation8 + $0x8] ss:$12 sps:$4 sm:$0xff]   ;;  %v3417_v49 = vld [vmem:[#allocation8 + $0x20] ss:$12 sps:$4 sm:$0xff]   ;;  %v3420_v51 = vld [vmem:[#allocation8 + $0xf8] ss:$12 sps:$4 sm:$0xff]  }
  0xad   : > { %1878 = vmatprep.subr.bf16.mxu1 %v3393_v24  ;;  %v3413_v46 = vld [vmem:[#allocation8 + $0xdc] ss:$12 sps:$4 sm:$0xff]   ;;  %v3422_v53 = vld [vmem:[#allocation8 + $0x38] ss:$12 sps:$4 sm:$0xff]   ;;  %v3431_v61 = vld [vmem:[#allocation8 + $0x120] ss:$12 sps:$4 sm:$0xff]  }
  0xae   : > { %3170 = vmatpush3.bf16.msra.mxu0 %v3167_v16  ;;  %v3421_v52 = vld [vmem:[#allocation8 + $0xf0] ss:$12 sps:$4 sm:$0xff]   ;;  %v3423_v55 = vld [vmem:[#allocation8 + $0x10c] ss:$12 sps:$4 sm:$0xff]   ;;  %v3426_v57 = vld [vmem:[#allocation8 + $0x108] ss:$12 sps:$4 sm:$0xff]  }
  0xaf   : > { %3172 = vmatprep.subr.bf16.mxu0 %v3171_v21  ;;  %v3425_v56 = vld [vmem:[#allocation8 + $0x110] ss:$12 sps:$4 sm:$0xff]   ;;  %v3430_v60 = vld [vmem:[#allocation8 + $0x128] ss:$12 sps:$4 sm:$0xff]   ;;  %v3435_v0 = vld [vmem:[#allocation8 + $0x140] ss:$12 sps:$4 sm:$0xff]  }
  0xb0   : > { %1879 = vmatpush1.bf16.msra.mxu1 %v3395_v27  ;;  %v3427_v58 = vld [vmem:[#allocation8 + $0x50] ss:$12 sps:$4 sm:$0xff]   ;;  %v3432_v62 = vld [vmem:[#allocation8 + $0x68] ss:$12 sps:$4 sm:$0xff]   ;;  %v3436_v1 = vld [vmem:[#allocation8 + $0x138] ss:$12 sps:$4 sm:$0xff]  }
  0xb1   : > { %1880 = vmatprep.subr.bf16.mxu1 %v3396_v28  ;;  %v3433_v63 = vld [vmem:[#allocation8 + $0x13c] ss:$12 sps:$4 sm:$0xff]   ;;  %v3437_v2 = vld [vmem:[#allocation8 + $0x80] ss:$12 sps:$4 sm:$0xff]   ;;  %v3443_v4 = vld [vmem:[#allocation8 + $0x158] ss:$12 sps:$4 sm:$0xff]  }
  0xb2   : > { %3174 = vmatpush3.bf16.msra.mxu0 %v3171_v21  ;;  %v3441_v3 = vld [vmem:[#allocation8 + $0x154] ss:$12 sps:$4 sm:$0xff]   ;;  %v3444_v5 = vld [vmem:[#allocation8 + $0x150] ss:$12 sps:$4 sm:$0xff]   ;;  %v3445_v6 = vld [vmem:[#allocation8 + $0x98] ss:$12 sps:$4 sm:$0xff]  }
  0xb3   : > { %3176 = vmatprep.subr.bf16.mxu0 %v3175_v29  ;;  %v3447_v7 = vld [vmem:[#allocation8 + $0x16c] ss:$12 sps:$4 sm:$0xff]   ;;  %v3449_v8 = vld [vmem:[#allocation8 + $0x170] ss:$12 sps:$4 sm:$0xff]   ;;  %v3450_v9 = vld [vmem:[#allocation8 + $0x168] ss:$12 sps:$4 sm:$0xff]  }
  0xb4   : > { %1881 = vmatpush1.bf16.msra.mxu1 %v3398_v30  ;;  %v3451_v10 = vld [vmem:[#allocation8 + $0xb0] ss:$12 sps:$4 sm:$0xff]   ;;  %v3456_v12 = vld [vmem:[#allocation8 + $0x248] ss:$12 sps:$4 sm:$0xff]   ;;  %v2704_v13 = vld [vmem:[%s4465_s2] ss:$0 sm:$0xff] }
  0xb5   : > { %1882 = vmatprep.subr.bf16.mxu1 %v3399_v33  ;;  %v3455_v11 = vld [vmem:[#allocation8 + $0x184] ss:$12 sps:$4 sm:$0xff]   ;;  %v4168_v25 = vld [vmem:[#allocation2 + $0x10] sm:$0x1]  ;;  %vm596_vm5 = vsmask.f32 1280 }
  0xb6   : > { %3178 = vmatpush3.bf16.msra.mxu0 %v3175_v29  ;;  %v4161_v23 = vld [vmem:[#allocation2 + $0x4] sm:$0x8]  ;;  %v2231_v26 = vunpack.c.l.bf16 %v4168_v25  ;;  %s3759_s25 = scalar_lea.vmem %s4413_s24, 256 }
  0xb7   : > { %3180 = vmatprep.subr.bf16.mxu0 %v3179_v34  ;;  %v2226_v24 = vunpack.c.l.bf16 %v4161_v23  ;;  %v528_v28 = vld [vmem:[#allocation2 + $0x4] sm:$0xc]  ;;  %p3760_p3 = scmp.ne.s32.totalorder %s4413_s24, %s3759_s25 }
  0xb8   : > { %1883 = vmatpush1.bf16.msra.mxu1 %v3401_v35 }
  0xb9   : > { %1884 = vmatprep.subr.bf16.mxu1 %v3402_v36  ;;  %v2237_v27 = vrot.slane %v2226_v24, 7  ;;  %p3761_p5 = pnand %p3760_p3, %p4069_p10 }
  0xba   : > { %3182 = vmatpush3.bf16.msra.mxu0 %v3179_v34 }
  0xbb   : > { %3184 = vmatprep.subr.bf16.mxu0 %v3183_v37  ;;  %p3762_p7 = pneg %p3761_p5 }
  0xbc   : > { %1885 = vmatpush1.bf16.msra.mxu1 %v3404_v38 }
  0xbd   : > { %1886 = vmatprep.subr.bf16.mxu1 %v3405_v39  ;;  %v2276_v39 = vrot.slane %v2231_v26, 1 }
  0xbe   : > { %3186 = vmatpush3.bf16.msra.mxu0 %v3183_v37 }
  0xbf   : > { %2919 = vmatprep.subr.bf16.mxu0 %v3410_v43 }
  0xc0   : > { %1887 = vmatpush1.bf16.msra.mxu1 %v3407_v41 }
  0xc1   : > { %3063 = vmatmul.mubr.f32.vlgmr.msra.gmra.mrb[0].mxu0 %v413_v40  ;;  %1888 = vmatprep.subr.bf16.mxu1 %v3408_v42 }
  0xc2   : > { %2920 = vmatpush3.bf16.msra.mxu0 %v3412_v45 }
  0xc3   : > { %2921 = vmatprep.subr.bf16.mxu0 %v3415_v47 }
  0xc4   : > { %1889 = vmatpush1.bf16.msra.mxu1 %v3411_v44 }
  0xc5   : > { %1890 = vmatprep.subr.bf16.mxu1 %v3413_v46 }
  0xc6   : > { %2922 = vmatpush3.bf16.msra.mxu0 %v3417_v49 }
  0xc7   : > { %2923 = vmatprep.subr.bf16.mxu0 %v3420_v51 }
  0xc8   : > { %1891 = vmatpush1.bf16.msra.mxu1 %v3416_v48 }
  0xc9   : > { %1892 = vmatprep.subr.bf16.mxu1 %v3418_v50 }
  0xca   : > { %2924 = vmatpush3.bf16.msra.mxu0 %v3422_v53 }
  0xcb   : > { %2925 = vmatprep.subr.bf16.mxu0 %v3425_v56 }
  0xcc   : > { %1893 = vmatpush1.bf16.msra.mxu1 %v3421_v52 }
  0xcd   : > { %1894 = vmatprep.subr.bf16.mxu1 %v3423_v55 }
  0xce   : > { %2926 = vmatpush3.bf16.msra.mxu0 %v3427_v58 }
  0xcf   : > { %2927 = vmatprep.subr.bf16.mxu0 %v3430_v60  ;;  %v4211_v60 = vcombine.low %v4168_v25, %v4168_v25 }
  0xd0   : > { %1895 = vmatpush1.bf16.msra.mxu1 %v3426_v57 }
  0xd1   : > { %1896 = vmatprep.subr.bf16.mxu1 %v3428_v59 }
  0xd2   : > { %2928 = vmatpush3.bf16.msra.mxu0 %v3432_v62 }
  0xd3   : > { %2929 = vmatprep.subr.bf16.mxu0 %v3435_v0 }
  0xd4   : > { %1897 = vmatpush1.bf16.msra.mxu1 %v3431_v61 }
  0xd5   : > { %1898 = vmatprep.subr.bf16.mxu1 %v3433_v63 }
  0xd6   : > { %2930 = vmatpush3.bf16.msra.mxu0 %v3437_v2 }
  0xd7   : > { %2931 = vmatprep.subr.bf16.mxu0 %v3443_v4 }
  0xd8   : > { %1899 = vmatpush1.bf16.msra.mxu1 %v3436_v1 }
  0xd9   : > { %1900 = vmatprep.subr.bf16.mxu1 %v3441_v3 }
  0xda   : > { %2932 = vmatpush3.bf16.msra.mxu0 %v3445_v6 }
  0xdb   : > { %2933 = vmatprep.subr.bf16.mxu0 %v3449_v8 }
  0xdc   : > { %1901 = vmatpush1.bf16.msra.mxu1 %v3444_v5 }
  0xdd   : > { %1902 = vmatprep.subr.bf16.mxu1 %v3447_v7 }
  0xde   : > { %2934 = vmatpush3.bf16.msra.mxu0 %v3451_v10 }
  0xdf   : > { %2941 = vmatprep.subr.bf16.mxu0 %v3456_v12 }
  0xe0   : > { %1903 = vmatpush1.bf16.msra.mxu1 %v3450_v9 }
  0xe1   : > { %1915 = vmatprep.subr.bf16.mxu1 %v3455_v11 }
 0x194   : > { %v3064_v14 = vpop.f32.mrb[0].mxu0 }
 0x195   : > { %v509_v15 = vadd.f32 %v3064_v14, %v2704_v13  ;;  %v503_v16 = vpop.f32.mrb[1].mxu0 }
 0x196   : > { %v504_v17 = vadd.f32 %v2704_v13, %v503_v16 }
 0x197   : > { %v513_v18 = vmul.f32 0.01, %v509_v15 }
 0x198   : > { %v512_v19 = vmul.f32 0.01, %v504_v17 }
 0x199   : > { %v4151_v20 = vmax.f32 %v509_v15, %v513_v18 }
 0x19a   : > { %v4153_v21 = vmax.f32 %v504_v17, %v512_v19 }
 0x19b   : > { %2259 = vrot.lane.b32.xlu1 %v4151_v20, %s3845_s22 }
 0x19c   : > { %v2898_v22 = vpack.c.bf16 %v4151_v20, %v4153_v21  ;;  %2257 = vrot.lane.b32.xlu0 %v4153_v21, %s3845_s22 }
 0x19e   : > { %2900 = vst [vmem:[#allocation2 + $0x8] sm:$0xff] %v2898_v22  }
 0x19f   : > { %2265 = vrot.lane.b32.xlu1 %v4151_v20, %s3846_s9 }
 0x1a0   : > { %2263 = vrot.lane.b32.xlu0 %v4153_v21, %s3846_s9 }
 0x1a5   : > { %v4173_v29 = vld [vmem:[#allocation2 + $0x8] sm:$0xf]  ;;  %v4175_v30 = vld [vmem:[#allocation2 + $0xc] sm:$0xf] }
 0x1a6   : > { %v4177_v31 = vld [vmem:[#allocation2 + $0x8] sm:$0xf]  ;;  %v2227_v32 = vunpack.c.l.bf16 %v4173_v29  ;;  %v2228_v33 = vunpack.c.l.bf16 %v4175_v30  ;;  %v4183_v34 = vcombine.low %v4161_v23, %v4173_v29  ;;  %v4185_v35 = vld [vmem:[#allocation2 + $0xc] sm:$0xf]  ;;  %v2707_v41 = vcombine.low %v528_v28, %v4173_v29 }
 0x1a7   : > { %v2229_v36 = vunpack.c.l.bf16 %v4177_v31  ;;  %v2712_v37 = vcombine.low %v4177_v31, %v4185_v35  ;;  %v2230_v38 = vunpack.c.l.bf16 %v4185_v35  ;;  %v3452_v40 = vld [vmem:[#allocation2 + $0xc] ss:$0 sps:$4 sm:$0x77]   ;;  %v2711_v3 = vcombine.low %v4173_v29, %v4175_v30  ;;  %v536_v28 = vld [vmem:[#allocation2 + $0x8] sm:$0xe] }
 0x1a8   : > { %v2238_v42 = vrot.slane %v2227_v32, 7  ;;  %v2240_v43 = vrot.slane %v2228_v33, 7  ;;  %v551_v46 = vshrl.u32 %v4183_v34, 16  ;;  %v553_v47 = vshll.u32 %v4183_v34, 16 }
 0x1a9   : > { %v2273_v44 = vrot.slane %v2229_v36, 1  ;;  %v2274_v45 = vrot.slane %v2230_v38, 1  ;;  %v558_v48 = vshll.u32 %v3452_v40, 16  ;;  %v562_v51 = vshrl.u32 %v3452_v40, 16 }
 0x1aa   : > { %v2239_v49 = vsel %vm617_vm0, %v2237_v27, %v2238_v42  ;;  %v2241_v50 = vsel %vm617_vm0, %v2238_v42, %v2240_v43  ;;  %v864_v52 = vshrl.u32 %v2707_v41, 16  ;;  %v555_v57 = vrot.slane %v553_v47, 1  ;;  %v3453_v43 = vld [vmem:[#allocation8 + $0x180] ss:$12 sps:$4 sm:$0xff]  }
 0x1ab   : > { %v3369_v53 = vpack.i.bf16 %v2241_v50, %v2239_v49  ;;  %v2275_v55 = vsel %vm568_vm1, %v2273_v44, %v2274_v45  ;;  %v2277_v56 = vsel %vm568_vm1, %v2274_v45, %v2276_v39  ;;  %v560_v59 = vrot.slane %v558_v48, 1  ;;  %v3458_v44 = vld [vmem:[#allocation8 + $0x188] ss:$12 sps:$4 sm:$0xff]  }
 0x1ac   : > { %v3364_v58 = vpack.i.bf16 %v2275_v55, %v2239_v49  ;;  %v3379_v61 = vpack.i.bf16 %v2277_v56, %v2275_v55  ;;  %v556_v62 = vor.u32 %v555_v57, %v551_v46  ;;  %v867_v63 = vshll.u32 %v2707_v41, 16  ;;  %v3463_v49 = vld [vmem:[#allocation8 + $0x260] ss:$12 sps:$4 sm:$0xff]   ;;  %v3571_v55 = vld [vmem:[#allocation2 + $0x10] ss:$0 sps:$4 sm:$0x33]  }
 0x1ad   : > { %3370 = vrot.lane.b32.xlu1 %v3369_v53, %s3846_s9  ;;  %v3374_v0 = vpack.i.bf16 %v2277_v56, %v2241_v50  ;;  %v564_v1 = vor.u32 %v562_v51, %v560_v59  ;;  %v866_v2 = vrot.slane %v864_v52, 2  ;;  %v871_v6 = vrot.slane %v562_v51, 2 }
 0x1ae   : > { %3365 = vrot.lane.b32.xlu0 %v3364_v58, %s3845_s22  ;;  %v561_v4 = vsel %vm549_vm2, %v556_v62, %v560_v59  ;;  %v869_v5 = vrot.slane %v867_v63, 3  ;;  %v872_v7 = vrot.slane %v558_v48, 3  ;;  %v574_v12 = vshrl.u32 %v2711_v3, 16  ;;  %v3462_v48 = vld [vmem:[#allocation8 + $0x19c] ss:$12 sps:$4 sm:$0xff]  }
 0x1af   : > { %v876_v8 = vshrl.u32 %v561_v4, 16  ;;  %v879_v9 = vshll.u32 %v561_v4, 16  ;;  %v884_v10 = vshrl.u32 %v564_v1, 16  ;;  %v887_v11 = vshll.u32 %v564_v1, 16  ;;  %v3464_v62 = vld [vmem:[#allocation8 + $0x1a0] ss:$12 sps:$4 sm:$0xff]  }
 0x1b0   : > { %v577_v13 = vshll.u32 %v2711_v3, 16  ;;  %v870_v18 = vor.u32 %v869_v5, %v866_v2  ;;  %v873_v19 = vor.u32 %v872_v7, %v871_v6  ;;  %v576_v22 = vrot.slane %v574_v12, 5  ;;  %v3468_v1 = vld [vmem:[#allocation8 + $0x278] ss:$12 sps:$4 sm:$0xff]   ;;  %v3465_v4 = vld [vmem:[#allocation8 + $0x1b0] ss:$12 sps:$4 sm:$0xff]  }
 0x1b1   : > { %3380 = vrot.lane.b32.xlu1 %v3379_v61, %s3846_s9  ;;  %v878_v14 = vrot.slane %v876_v8, 2  ;;  %v881_v15 = vrot.slane %v879_v9, 3  ;;  %v886_v16 = vrot.slane %v884_v10, 2  ;;  %v889_v17 = vrot.slane %v887_v11, 3  ;;  %v3460_v61 = vld [vmem:[#allocation8 + $0x198] ss:$12 sps:$4 sm:$0xff]  }
 0x1b2   : > { %3375 = vrot.lane.b32.xlu0 %v3374_v0, %s3845_s22  ;;  %v579_v27 = vrot.slane %v577_v13, 6  ;;  %v606_v41 = vshrl.u32 %v4211_v60, 16  ;;  %v590_v42 = vrot.slane %v2712_v37, 6  ;;  %v609_v46 = vshll.u32 %v4211_v60, 16  ;;  %v3469_v7 = vld [vmem:[#allocation8 + $0x1b8] ss:$12 sps:$4 sm:$0xff]  }
 0x1b3   : > { %v882_v39 = vor.u32 %v881_v15, %v878_v14  ;;  %v890_v40 = vor.u32 %v889_v17, %v886_v16  ;;  %v591_v50 = vrot.slane %v4211_v60, 6  ;;  %v2714_v51 = vcombine.low %v536_v28, %v4185_v35  ;;  %v3472_v12 = vld [vmem:[#allocation8 + $0x1cc] ss:$12 sps:$4 sm:$0xff]   ;;  %v3473_v17 = vld [vmem:[#allocation8 + $0x290] ss:$12 sps:$4 sm:$0xff]   ;;  %s4502_s9 = sld [smem:[#allocation19_spill]] }
 0x1b4   : > { %v580_v45 = vor.u32 %v579_v27, %v576_v22  ;;  %v874_v52 = vsel %vm862_vm3, %v870_v18, %v873_v19  ;;  %v4226_v56 = vmul.f32 2.0, %v2226_v24  ;;  %v919_v59 = vshrl.u32 %v590_v42, 16  ;;  %v3467_v24 = vld [vmem:[#allocation8 + $0x1b4] ss:$12 sps:$4 sm:$0xff]  }
 0x1b5   : > { %v891_v47 = vsel %vm862_vm3, %v882_v39, %v890_v40  ;;  %v4230_v60 = vmul.f32 2.0, %v2231_v26  ;;  %v4232_v63 = vrot.slane %v606_v41, 6  ;;  %v592_v0 = vsel %vm589_vm4, %v590_v42, %v591_v50  ;;  %v3470_v28 = vld [vmem:[#allocation8 + $0x1c8] ss:$12 sps:$4 sm:$0xff]  }
 0x1b6   : > { %1904 = vmatprep.mubr.bf16.mxu1 %v891_v47  ;;  %2076 = vmatprep.mubr.bf16.mxu0 %v891_v47  ;;  %v910_v53 = vshrl.u32 %v580_v45, 16  ;;  %v913_v37 = vshll.u32 %v580_v45, 16  ;;  %v598_v2 = vshrl.u32 %v2714_v51, 16  ;;  %v4235_v3 = vrot.slane %v609_v46, 7  ;;  %v3477_v46 = vld [vmem:[#allocation8 + $0x1e4] ss:$12 sps:$4 sm:$0xff]  }
 0x1b7   : > { %1905 = vmatmul.mubr.bf16.vlgmr.msra.gmra.mrb[0].mxu1 %v874_v52  ;;  %2077 = vmatmul.mubr.bf16.vlgmr.msra.gmra.mrb[4].mxu0 %v874_v52  ;;  %v921_v5 = vrot.slane %v919_v59, 2  ;;  %v922_v6 = vshll.u32 %v590_v42, 16  ;;  %v619_v25 = vrot.slane %v3571_v55, 7  ;;  %v2310_v26 = vrot.slane %v4226_v56, 7  ;;  %v3475_v59 = vld [vmem:[#allocation8 + $0x1e0] ss:$12 sps:$4 sm:$0xff]  }
 0x1b8   : > { %1916 = vmatpush1.bf16.msra.mxu1 %v3453_v43  ;;  %2942 = vmatpush3.bf16.msra.mxu0 %v3458_v44  ;;  %v912_v57 = vrot.slane %v910_v53, 2  ;;  %v915_v58 = vrot.slane %v913_v37, 3  ;;  %v601_v8 = vshll.u32 %v2714_v51, 16  ;;  %v927_v9 = vshrl.u32 %v592_v0, 16  ;;  %v3474_v43 = vld [vmem:[#allocation8 + $0x1d0] ss:$12 sps:$4 sm:$0xff]  }
 0x1b9   : > { %1917 = vmatprep.subr.bf16.mxu1 %v3462_v48  ;;  %2943 = vmatprep.subr.bf16.mxu0 %v3463_v49  ;;  %v930_v10 = vshll.u32 %v592_v0, 16  ;;  %v2330_v11 = vrot.slane %v4230_v60, 1  ;;  %v2710_v13 = vcombine.low %v4175_v30, %v4175_v30  ;;  %v924_v14 = vrot.slane %v922_v6, 3  ;;  %v3479_v60 = vld [vmem:[#allocation8 + $0x1e8] ss:$12 sps:$4 sm:$0xff]  }
 0x1ba   : > { %v916_v23 = vor.u32 %v915_v58, %v912_v57  ;;  %v618_v15 = vrot.slane %v2714_v51, 7  ;;  %v2305_v16 = vmul.f32 2.0, %v2227_v32  ;;  %v600_v18 = vrot.slane %v598_v2, 6  ;;  %v3483_v30 = vld [vmem:[#allocation8 + $0x2c0] ss:$12 sps:$4 sm:$0xff]  }
 0x1bb   : > { %v929_v19 = vrot.slane %v927_v9, 2  ;;  %v932_v22 = vrot.slane %v930_v10, 3  ;;  %v2321_v27 = vmul.f32 2.0, %v2229_v36  ;;  %v925_v39 = vor.u32 %v924_v14, %v921_v5  ;;  %v3478_v36 = vld [vmem:[#allocation8 + $0x2a8] ss:$12 sps:$4 sm:$0xff]  }
 0x1bc   : > { %1947 = vmatprep.mubr.bf16.mxu1 %v916_v23  ;;  %2117 = vmatprep.mubr.bf16.mxu0 %v916_v23  ;;  %v620_v40 = vsel %vm617_vm0, %v618_v15, %v619_v25  ;;  %v953_v41 = vshrl.u32 %v618_v15, 16  ;;  %v956_v42 = vshll.u32 %v618_v15, 16  ;;  %v603_v44 = vrot.slane %v601_v8, 7  ;;  %v3482_v23 = vld [vmem:[#allocation8 + $0x1fc] ss:$12 sps:$4 sm:$0xff]  }
 0x1bd   : > { %1918 = vmatpush1.bf16.msra.mxu1 %v3460_v61  ;;  %2944 = vmatpush3.bf16.msra.mxu0 %v3464_v62  ;;  %v933_v45 = vor.u32 %v932_v22, %v929_v19  ;;  %v961_v29 = vshrl.u32 %v620_v40, 16  ;;  %v964_v32 = vshll.u32 %v620_v40, 16  ;;  %v2311_v49 = vrot.slane %v2305_v16, 7  ;;  %v3484_v5 = vld [vmem:[#allocation8 + $0x200] ss:$12 sps:$4 sm:$0xff]  }
 0x1be   : > { %1919 = vmatprep.subr.bf16.mxu1 %v3467_v24  ;;  %2945 = vmatprep.subr.bf16.mxu0 %v3468_v1  ;;  %v955_v47 = vrot.slane %v953_v41, 2  ;;  %v958_v48 = vrot.slane %v956_v42, 3  ;;  %v2322_v31 = vmul.f32 2.0, %v2230_v38  ;;  %v2327_v53 = vrot.slane %v2321_v27, 1  ;;  %v3487_v6 = vld [vmem:[#allocation8 + $0x214] ss:$12 sps:$4 sm:$0xff]  }
 0x1bf   : > { %v4249_v50 = vsel %vm862_vm3, %v925_v39, %v933_v45  ;;  %v963_v51 = vrot.slane %v961_v29, 2  ;;  %v966_v52 = vrot.slane %v964_v32, 3  ;;  %v4252_v55 = vsel %vm617_vm0, %v2310_v26, %v2311_v49  ;;  %v3488_v25 = vld [vmem:[#allocation8 + $0x2d8] ss:$12 sps:$4 sm:$0xff]   ;;  %v3485_v9 = vld [vmem:[#allocation8 + $0x210] ss:$12 sps:$4 sm:$0xff]  }
 0x1c0   : > { %v959_v37 = vor.u32 %v958_v48, %v955_v47  ;;  %v2328_v56 = vrot.slane %v2322_v31, 1  ;;  %v2306_v57 = vmul.f32 2.0, %v2228_v33  ;;  %v569_v35 = vrot.slane %v4183_v34, 1  ;;  %v3489_v10 = vld [vmem:[#allocation8 + $0x218] ss:$12 sps:$4 sm:$0xff]  }
 0x1c1   : > { %1920 = vmatpush1.bf16.msra.mxu1 %v3465_v4  ;;  %2946 = vmatpush3.bf16.msra.mxu0 %v3469_v7  ;;  %v570_v38 = vrot.slane %v2710_v13, 1  ;;  %v967_v58 = vor.u32 %v966_v52, %v963_v51  ;;  %v604_v33 = vor.u32 %v603_v44, %v600_v18  ;;  %v612_v34 = vor.u32 %v4235_v3, %v4232_v63  ;;  %v3480_v4 = vld [vmem:[#allocation8 + $0x1f8] ss:$12 sps:$4 sm:$0xff]   ;;  %v3493_v16 = vld [vmem:[#allocation8 + $0x2f0] ss:$12 sps:$4 sm:$0xff]  }
 0x1c2   : > { %1921 = vmatprep.subr.bf16.mxu1 %v3472_v12  ;;  %2947 = vmatprep.subr.bf16.mxu0 %v3473_v17  ;;  %v4258_v61 = vsel %vm568_vm1, %v2327_v53, %v2328_v56  ;;  %v2313_v62 = vrot.slane %v2306_v57, 7  ;;  %v4261_v0 = vsel %vm568_vm1, %v2328_v56, %v2330_v11  ;;  %v3492_v15 = vld [vmem:[#allocation8 + $0x22c] ss:$12 sps:$4 sm:$0xff]   ;;  %v3490_v27 = vld [vmem:[#allocation8 + $0x228] ss:$12 sps:$4 sm:$0xff]  }
 0x1c3   : > { %v4266_v24 = vsel %vm862_vm3, %v959_v37, %v967_v58  ;;  %v571_v2 = vsel %vm568_vm1, %v569_v35, %v570_v38  ;;  %v613_v26 = vsel %vm596_vm5, %v604_v33, %v612_v34  ;;  %v901_v3 = vshrl.u32 %v570_v38, 16  ;;  %v3499_v44 = vld [vmem:[#allocation8 + $0x3c8] ss:$12 sps:$4 sm:$0xff]   ;;  %v3495_v32 = vld [vmem:[#allocation8 + $0x240] ss:$12 sps:$4 sm:$0xff]  }
 0x1c4   : > { %v4269_v1 = vsel %vm617_vm0, %v2311_v49, %v2313_v62  ;;  %v893_v7 = vshrl.u32 %v571_v2, 16  ;;  %v896_v63 = vshll.u32 %v571_v2, 16  ;;  %v904_v8 = vshll.u32 %v570_v38, 16  ;;  %v3503_v49 = vld [vmem:[#allocation8 + $0x25c] ss:$12 sps:$4 sm:$0xff]  }
 0x1c5   : > { %1922 = vmatpush1.bf16.msra.mxu1 %v3470_v28  ;;  %2948 = vmatpush3.bf16.msra.mxu0 %v3474_v43  ;;  %v936_v11 = vshrl.u32 %v604_v33, 16  ;;  %v939_v12 = vshll.u32 %v604_v33, 16  ;;  %v944_v13 = vshrl.u32 %v613_v26, 16  ;;  %v947_v14 = vshll.u32 %v613_v26, 16  ;;  %v3494_v28 = vld [vmem:[#allocation8 + $0x230] ss:$12 sps:$4 sm:$0xff]  }
 0x1c6   : > { %1923 = vmatprep.subr.bf16.mxu1 %v3477_v46  ;;  %2949 = vmatprep.subr.bf16.mxu0 %v3478_v36  ;;  %v895_v17 = vrot.slane %v893_v7, 2  ;;  %v898_v18 = vrot.slane %v896_v63, 3  ;;  %v903_v19 = vrot.slane %v901_v3, 2  ;;  %v906_v22 = vrot.slane %v904_v8, 3  ;;  %v3497_v43 = vld [vmem:[#allocation8 + $0x244] ss:$12 sps:$4 sm:$0xff]  }
 0x1c7   : > { %v938_v39 = vrot.slane %v936_v11, 2  ;;  %v941_v40 = vrot.slane %v939_v12, 3  ;;  %v946_v41 = vrot.slane %v944_v13, 2  ;;  %v949_v42 = vrot.slane %v947_v14, 3  ;;  %v3500_v46 = vld [vmem:[#allocation8 + $0x308] ss:$12 sps:$4 sm:$0xff]  }
 0x1c8   : > { %v899_v45 = vor.u32 %v898_v18, %v895_v17  ;;  %v907_v29 = vor.u32 %v906_v22, %v903_v19  ;;  %v3504_v36 = vld [vmem:[#allocation8 + $0x3e0] ss:$12 sps:$4 sm:$0xff]   ;;  %v3501_v52 = vld [vmem:[#allocation8 + $0x258] ss:$12 sps:$4 sm:$0xff]   ;;  %v3506_v57 = vld [vmem:[#allocation8 + $0x270] ss:$12 sps:$4 sm:$0xff]  }
 0x1c9   : > { %1924 = vmatpush1.bf16.msra.mxu1 %v3475_v59  ;;  %2950 = vmatpush3.bf16.msra.mxu0 %v3479_v60  ;;  %v942_v47 = vor.u32 %v941_v40, %v938_v39  ;;  %v950_v48 = vor.u32 %v949_v42, %v946_v41  ;;  %v3505_v53 = vld [vmem:[#allocation8 + $0x320] ss:$12 sps:$4 sm:$0xff]   ;;  %v3509_v56 = vld [vmem:[#allocation8 + $0x3f8] ss:$12 sps:$4 sm:$0xff]   ;;  %v3514_v58 = vld [vmem:[#allocation8 + $0x410] ss:$12 sps:$4 sm:$0xff]  }
 0x1ca   : > { %1925 = vmatprep.subr.bf16.mxu1 %v3482_v23  ;;  %2951 = vmatprep.subr.bf16.mxu0 %v3483_v30  ;;  %v4273_v31 = vsel %vm862_vm3, %v899_v45, %v907_v29  ;;  %v3508_v37 = vld [vmem:[#allocation8 + $0x274] ss:$12 sps:$4 sm:$0xff]   ;;  %v3510_v35 = vld [vmem:[#allocation8 + $0x338] ss:$12 sps:$4 sm:$0xff]   ;;  %v3515_v60 = vld [vmem:[#allocation8 + $0x350] ss:$12 sps:$4 sm:$0xff]  }
 0x1cb   : > { %v4277_v51 = vsel %vm862_vm3, %v942_v47, %v950_v48  ;;  %v3513_v38 = vld [vmem:[#allocation8 + $0x28c] ss:$12 sps:$4 sm:$0xff]   ;;  %v3511_v59 = vld [vmem:[#allocation8 + $0x288] ss:$12 sps:$4 sm:$0xff]   ;;  %v3518_v62 = vld [vmem:[#allocation8 + $0x2a4] ss:$12 sps:$4 sm:$0xff]  }
 0x1cc   : > { %v3519_v23 = vld [vmem:[#allocation8 + $0x428] ss:$12 sps:$4 sm:$0xff]   ;;  %v3516_v30 = vld [vmem:[#allocation8 + $0x2a0] ss:$12 sps:$4 sm:$0xff]   ;;  %v3526_v26 = vld [vmem:[#allocation8 + $0x2d0] ss:$12 sps:$4 sm:$0xff]  }
 0x1cd   : > { %1926 = vmatpush1.bf16.msra.mxu1 %v3480_v4  ;;  %2952 = vmatpush3.bf16.msra.mxu0 %v3484_v5  ;;  %v3520_v33 = vld [vmem:[#allocation8 + $0x368] ss:$12 sps:$4 sm:$0xff]   ;;  %v3524_v2 = vld [vmem:[#allocation8 + $0x440] ss:$12 sps:$4 sm:$0xff]   ;;  %v3521_v4 = vld [vmem:[#allocation8 + $0x2b8] ss:$12 sps:$4 sm:$0xff]  }
 0x1ce   : > { %1927 = vmatprep.subr.bf16.mxu1 %v3487_v6  ;;  %2953 = vmatprep.subr.bf16.mxu0 %v3488_v25  ;;  %v3523_v34 = vld [vmem:[#allocation8 + $0x2bc] ss:$12 sps:$4 sm:$0xff]   ;;  %v3525_v5 = vld [vmem:[#allocation8 + $0x380] ss:$12 sps:$4 sm:$0xff]   ;;  %v3529_v25 = vld [vmem:[#allocation8 + $0x458] ss:$12 sps:$4 sm:$0xff]  }
 0x1cf   : > { %v3528_v6 = vld [vmem:[#allocation8 + $0x2d4] ss:$12 sps:$4 sm:$0xff]   ;;  %v3530_v7 = vld [vmem:[#allocation8 + $0x398] ss:$12 sps:$4 sm:$0xff]   ;;  %v3534_v3 = vld [vmem:[#allocation8 + $0x470] ss:$12 sps:$4 sm:$0xff]  }
 0x1d0   : > { %v3533_v63 = vld [vmem:[#allocation8 + $0x2ec] ss:$12 sps:$4 sm:$0xff]   ;;  %v3531_v8 = vld [vmem:[#allocation8 + $0x2e8] ss:$12 sps:$4 sm:$0xff]   ;;  %v3847_v12 = vmov 0.0  }
 0x1d1   : > { %1928 = vmatpush1.bf16.msra.mxu1 %v3485_v9  ;;  %2954 = vmatpush3.bf16.msra.mxu0 %v3489_v10  ;;  %v3535_v9 = vld [vmem:[#allocation8 + $0x3b0] ss:$12 sps:$4 sm:$0xff]   ;;  %v3536_v11 = vld [vmem:[#allocation8 + $0x300] ss:$12 sps:$4 sm:$0xff]   ;;  %v3539_v13 = vld [vmem:[#allocation8 + $0x488] ss:$12 sps:$4 sm:$0xff]  }
 0x1d2   : > { %1929 = vmatprep.subr.bf16.mxu1 %v3492_v15  ;;  %2955 = vmatprep.subr.bf16.mxu0 %v3493_v16  ;;  %v3538_v10 = vld [vmem:[#allocation8 + $0x304] ss:$12 sps:$4 sm:$0xff]   ;;  %v3542_v14 = vld [vmem:[#allocation8 + $0x31c] ss:$12 sps:$4 sm:$0xff]   ;;  %v3543_v16 = vld [vmem:[#allocation8 + $0x4a0] ss:$12 sps:$4 sm:$0xff]  }
 0x1d3   : > { %v3540_v15 = vld [vmem:[#allocation8 + $0x318] ss:$12 sps:$4 sm:$0xff]   ;;  %v3546_v17 = vld [vmem:[#allocation8 + $0x334] ss:$12 sps:$4 sm:$0xff]   ;;  %v3544_v18 = vld [vmem:[#allocation8 + $0x330] ss:$12 sps:$4 sm:$0xff]  }
 0x1d4   : > { %v3547_v19 = vld [vmem:[#allocation8 + $0x4b8] ss:$12 sps:$4 sm:$0xff]   ;;  %v3552_v40 = vld [vmem:[#allocation8 + $0x360] ss:$12 sps:$4 sm:$0xff]   ;;  %v3555_v41 = vld [vmem:[#allocation8 + $0x4e8] ss:$12 sps:$4 sm:$0xff]  }
 0x1d5   : > { %1930 = vmatpush1.bf16.msra.mxu1 %v3490_v27  ;;  %2956 = vmatpush3.bf16.msra.mxu0 %v3494_v28  ;;  %v3550_v22 = vld [vmem:[#allocation8 + $0x34c] ss:$12 sps:$4 sm:$0xff]   ;;  %v3548_v27 = vld [vmem:[#allocation8 + $0x348] ss:$12 sps:$4 sm:$0xff]   ;;  %v3551_v28 = vld [vmem:[#allocation8 + $0x4d0] ss:$12 sps:$4 sm:$0xff]  }
 0x1d6   : > { %1931 = vmatprep.subr.bf16.mxu1 %v3497_v43  ;;  %2963 = vmatprep.subr.bf16.mxu0 %v3499_v44  ;;  %v3554_v39 = vld [vmem:[#allocation8 + $0x364] ss:$12 sps:$4 sm:$0xff]   ;;  %v3558_v42 = vld [vmem:[#allocation8 + $0x37c] ss:$12 sps:$4 sm:$0xff]   ;;  %v3559_v44 = vld [vmem:[#allocation8 + $0x500] ss:$12 sps:$4 sm:$0xff]  }
 0x1d7   : > { %v3556_v43 = vld [vmem:[#allocation8 + $0x378] ss:$12 sps:$4 sm:$0xff]   ;;  %v3562_v45 = vld [vmem:[#allocation8 + $0x394] ss:$12 sps:$4 sm:$0xff]   ;;  %v3560_v29 = vld [vmem:[#allocation8 + $0x390] ss:$12 sps:$4 sm:$0xff]  }
 0x1d8   : > { %2118 = vmatmul.mubr.bf16.vlgmr.msra.gmra.mrb[8].mxu0 %v4273_v31  ;;  %v3564_v47 = vld [vmem:[#allocation8 + $0x3a8] ss:$12 sps:$4 sm:$0xff]   ;;  %v3567_v48 = vld [vmem:[#allocation8 + $0x530] ss:$12 sps:$4 sm:$0xff]  }
 0x1d9   : > { %1932 = vmatpush1.bf16.msra.mxu1 %v3495_v32  ;;  %2964 = vmatpush3.bf16.msra.mxu0 %v3500_v46  ;;  %v3563_v32 = vld [vmem:[#allocation8 + $0x518] ss:$12 sps:$4 sm:$0xff]  }
 0x1da   : > { %2158 = vmatprep.mubr.bf16.mxu0 %v4277_v51  ;;  %1933 = vmatprep.subr.bf16.mxu1 %v3503_v49  ;;  %v3566_v46 = vld [vmem:[#allocation8 + $0x3ac] ss:$12 sps:$4 sm:$0xff]   ;;  %v3570_v49 = vld [vmem:[#allocation8 + $0x3c4] ss:$12 sps:$4 sm:$0xff]  }
 0x1db   : > { %2965 = vmatprep.subr.bf16.mxu0 %v3504_v36 }
 0x1dd   : > { %1934 = vmatpush1.bf16.msra.mxu1 %v3501_v52  ;;  %2966 = vmatpush3.bf16.msra.mxu0 %v3505_v53  ;;  %v3574_v52 = vld [vmem:[#allocation8 + $0x3dc] ss:$12 sps:$4 sm:$0xff]   ;;  %v847_v53 = vlaneseq }
 0x1de   : > { %1935 = vmatprep.subr.bf16.mxu1 %v3508_v37  ;;  %2967 = vmatprep.subr.bf16.mxu0 %v3509_v56  ;;  %v3572_v37 = vld [vmem:[#allocation8 + $0x3d8] ss:$12 sps:$4 sm:$0xff]  }
 0x1e1   : > { %1936 = vmatpush1.bf16.msra.mxu1 %v3506_v57  ;;  %2968 = vmatpush3.bf16.msra.mxu0 %v3510_v35  ;;  %v3577_v57 = vld [vmem:[#allocation8 + $0x3f4] ss:$12 sps:$4 sm:$0xff]  }
 0x1e2   : > { %1937 = vmatprep.subr.bf16.mxu1 %v3513_v38  ;;  %2969 = vmatprep.subr.bf16.mxu0 %v3514_v58  ;;  %v4293_v38 = vand.u32 127, %v847_v53  ;;  %v3575_v58 = vld [vmem:[#allocation8 + $0x3f0] ss:$12 sps:$4 sm:$0xff]  }
 0x1e4   : > { %vm2232_vm7 = vcmp.ge.s32.totalorder %v4293_v38, 8  ;;  %vm2250_vm8 = vcmp.lt.s32.totalorder %v4293_v38, 120 }
 0x1e5   : > { %1938 = vmatpush1.bf16.msra.mxu1 %v3511_v59  ;;  %2970 = vmatpush3.bf16.msra.mxu0 %v3515_v60  ;;  %v3580_v60 = vld [vmem:[#allocation8 + $0x40c] ss:$12 sps:$4 sm:$0xff]  }
 0x1e6   : > { %1939 = vmatprep.subr.bf16.mxu1 %v3518_v62  ;;  %2971 = vmatprep.subr.bf16.mxu0 %v3519_v23 }
 0x1e9   : > { %1940 = vmatpush1.bf16.msra.mxu1 %v3516_v30  ;;  %2972 = vmatpush3.bf16.msra.mxu0 %v3520_v33  ;;  %v3578_v33 = vld [vmem:[#allocation8 + $0x408] ss:$12 sps:$4 sm:$0xff]  }
 0x1ea   : > { %1941 = vmatprep.subr.bf16.mxu1 %v3523_v34  ;;  %2973 = vmatprep.subr.bf16.mxu0 %v3524_v2 }
 0x1ed   : > { %1942 = vmatpush1.bf16.msra.mxu1 %v3521_v4  ;;  %2974 = vmatpush3.bf16.msra.mxu0 %v3525_v5 }
 0x1ee   : > { %1943 = vmatprep.subr.bf16.mxu1 %v3528_v6  ;;  %2975 = vmatprep.subr.bf16.mxu0 %v3529_v25  ;;  %v3583_v6 = vld [vmem:[#allocation8 + $0x424] ss:$12 sps:$4 sm:$0xff]  }
 0x1f1   : > { %1944 = vmatpush1.bf16.msra.mxu1 %v3526_v26  ;;  %2976 = vmatpush3.bf16.msra.mxu0 %v3530_v7 }
 0x1f2   : > { %1945 = vmatprep.subr.bf16.mxu1 %v3533_v63  ;;  %2977 = vmatprep.subr.bf16.mxu0 %v3534_v3 }
 0x1f5   : > { %1946 = vmatpush1.bf16.msra.mxu1 %v3531_v8  ;;  %2978 = vmatpush3.bf16.msra.mxu0 %v3535_v9 }
 0x1f6   : > { %1958 = vmatprep.subr.bf16.mxu1 %v3538_v10  ;;  %3065 = vmatprep.subr.bf16.mxu0 %v3847_v12 }
 0x1f8   : > { %1948 = vmatmul.mubr.bf16.vlgmr.msra.gmra.mrb[0].mxu1 %v4273_v31  ;;  %2159 = vmatmul.mubr.bf16.vlgmr.msra.gmra.mrb[12].mxu0 %v4249_v50 }
 0x1f9   : > { %1959 = vmatpush1.bf16.msra.mxu1 %v3536_v11  ;;  %1990 = vmatprep.mubr.bf16.mxu1 %v4277_v51  ;;  %v3568_v51 = vld [vmem:[#allocation8 + $0x3c0] ss:$12 sps:$4 sm:$0xff]  }
 0x1fa   : > { %3066 = vmatpush3.bf16.msra.mxu0 %v3539_v13  ;;  %1960 = vmatprep.subr.bf16.mxu1 %v3542_v14  ;;  %v3581_v11 = vld [vmem:[#allocation8 + $0x420] ss:$12 sps:$4 sm:$0xff]  }
 0x1fb   : > { %3067 = vmatprep.subr.bf16.mxu0 %v3847_v12  ;;  %3081 = vmatprep.mubr.msk.bf16.mxu0 %vm3848_vm6, %v3847_v12 }
 0x1fd   : > { %1961 = vmatpush1.bf16.msra.mxu1 %v3540_v15 }
 0x1fe   : > { %3068 = vmatpush3.bf16.msra.mxu0 %v3543_v16  ;;  %1962 = vmatprep.subr.bf16.mxu1 %v3546_v17 }
 0x1ff   : > { %3069 = vmatprep.subr.bf16.mxu0 %v3847_v12 }
 0x201   : > { %1963 = vmatpush1.bf16.msra.mxu1 %v3544_v18 }
 0x202   : > { %3070 = vmatpush3.bf16.msra.mxu0 %v3547_v19  ;;  %1964 = vmatprep.subr.bf16.mxu1 %v3550_v22 }
 0x203   : > { %3071 = vmatprep.subr.bf16.mxu0 %v3847_v12 }
 0x205   : > { %1965 = vmatpush1.bf16.msra.mxu1 %v3548_v27 }
 0x206   : > { %3072 = vmatpush3.bf16.msra.mxu0 %v3551_v28  ;;  %1966 = vmatprep.subr.bf16.mxu1 %v3554_v39  ;;  %v3584_v39 = vld [vmem:[#allocation8 + $0x438] ss:$12 sps:$4 sm:$0xff]  }
 0x207   : > { %3073 = vmatprep.subr.bf16.mxu0 %v3847_v12 }
 0x209   : > { %1967 = vmatpush1.bf16.msra.mxu1 %v3552_v40  ;;  %v3589_v40 = vld [vmem:[#allocation8 + $0x454] ss:$12 sps:$4 sm:$0xff]  }
 0x20a   : > { %3074 = vmatpush3.bf16.msra.mxu0 %v3555_v41  ;;  %1968 = vmatprep.subr.bf16.mxu1 %v3558_v42  ;;  %v3587_v41 = vld [vmem:[#allocation8 + $0x450] ss:$12 sps:$4 sm:$0xff]   ;;  %v3592_v42 = vld [vmem:[#allocation8 + $0x46c] ss:$12 sps:$4 sm:$0xff]  }
 0x20b   : > { %3075 = vmatprep.subr.bf16.mxu0 %v3847_v12 }
 0x20d   : > { %1969 = vmatpush1.bf16.msra.mxu1 %v3556_v43  ;;  %v4283_v31 = vpop.permute.xlu1 %2259  ;;  %v3590_v43 = vld [vmem:[#allocation8 + $0x468] ss:$12 sps:$4 sm:$0xff]  }
 0x20e   : > { %3076 = vmatpush3.bf16.msra.mxu0 %v3559_v44  ;;  %1970 = vmatprep.subr.bf16.mxu1 %v3562_v45  ;;  %v4285_v36 = vpop.permute.xlu0 %2257  ;;  %v3595_v44 = vld [vmem:[#allocation8 + $0x484] ss:$12 sps:$4 sm:$0xff]   ;;  %v3593_v45 = vld [vmem:[#allocation8 + $0x480] ss:$12 sps:$4 sm:$0xff]  }
 0x20f   : > { %3077 = vmatprep.subr.bf16.mxu0 %v3847_v12 }
 0x211   : > { %1971 = vmatpush1.bf16.msra.mxu1 %v3560_v29  ;;  %v4288_v56 = vpop.permute.xlu1 %2265  ;;  %v3598_v29 = vld [vmem:[#allocation8 + $0x49c] ss:$12 sps:$4 sm:$0xff]  }
 0x212   : > { %3078 = vmatpush3.bf16.msra.mxu0 %v3563_v32  ;;  %1972 = vmatprep.subr.bf16.mxu1 %v3566_v46  ;;  %v4290_v35 = vpop.permute.xlu0 %2263  ;;  %v3596_v32 = vld [vmem:[#allocation8 + $0x498] ss:$12 sps:$4 sm:$0xff]   ;;  %v3601_v46 = vld [vmem:[#allocation8 + $0x4b4] ss:$12 sps:$4 sm:$0xff]  }
 0x213   : > { %3079 = vmatprep.subr.bf16.mxu0 %v3847_v12 }
 0x215   : > { %1973 = vmatpush1.bf16.msra.mxu1 %v3564_v47  ;;  %v3599_v47 = vld [vmem:[#allocation8 + $0x4b0] ss:$12 sps:$4 sm:$0xff]  }
 0x216   : > { %3080 = vmatpush3.bf16.msra.mxu0 %v3567_v48  ;;  %1974 = vmatprep.subr.bf16.mxu1 %v3570_v49  ;;  %v3604_v48 = vld [vmem:[#allocation8 + $0x4cc] ss:$12 sps:$4 sm:$0xff]   ;;  %v3602_v49 = vld [vmem:[#allocation8 + $0x4c8] ss:$12 sps:$4 sm:$0xff]  }
 0x219   : > { %3082 = vmatmul.mubr.bf16.vlgmr.msra.gmra.mrb[16].mxu0 %v4266_v24  ;;  %1975 = vmatpush1.bf16.msra.mxu1 %v3568_v51  ;;  %v3607_v51 = vld [vmem:[#allocation8 + $0x4e4] ss:$12 sps:$4 sm:$0xff]  }
 0x21a   : > { %1976 = vmatprep.subr.bf16.mxu1 %v3574_v52  ;;  %v3605_v52 = vld [vmem:[#allocation8 + $0x4e0] ss:$12 sps:$4 sm:$0xff]  }
 0x21d   : > { %1977 = vmatpush1.bf16.msra.mxu1 %v3572_v37  ;;  %v3610_v37 = vld [vmem:[#allocation8 + $0x4fc] ss:$12 sps:$4 sm:$0xff]  }
 0x21e   : > { %1978 = vmatprep.subr.bf16.mxu1 %v3577_v57  ;;  %v3613_v57 = vld [vmem:[#allocation8 + $0x514] ss:$12 sps:$4 sm:$0xff]  }
 0x21f   : > { %v3371_v59 = vpop.permute.xlu1 %3370 }
 0x220   : > { %v3366_v62 = vpop.permute.xlu0 %3365  ;;  %v3372_v34 = vunpack.i.l.bf16 %v3371_v59  ;;  %v3373_v9 = vunpack.i.h.bf16 %v3371_v59  ;;  %v3614_v59 = vld [vmem:[#allocation8 + $0x528] ss:$12 sps:$4 sm:$0xff]  }
 0x221   : > { %v3368_v23 = vunpack.i.h.bf16 %v3366_v62  ;;  %v3367_v30 = vunpack.i.l.bf16 %v3366_v62  ;;  %1979 = vmatpush1.bf16.msra.mxu1 %v3575_v58  ;;  %v3616_v58 = vld [vmem:[#allocation8 + $0x52c] ss:$12 sps:$4 sm:$0xff]  }
 0x222   : > { %1980 = vmatprep.subr.bf16.mxu1 %v3580_v60  ;;  %v4311_v12 = vsel %vm2250_vm8, %v3372_v34, 0.0  ;;  %v4341_v22 = vsel %vm2250_vm8, %v3373_v9, 0.0  ;;  %v2352_v60 = vld [vmem:[#allocation9] sm:$0xff]  ;;  %v2353_v62 = vld [vmem:[#allocation9 + $0x8] sm:$0xff] }
 0x223   : > { %v4298_v2 = vsel %vm2232_vm7, %v3368_v23, 0.0  ;;  %v4302_v4 = vsel %vm2232_vm7, %v3367_v30, 0.0  ;;  %v3381_v5 = vpop.permute.xlu1 %3380  ;;  %v2354_v23 = vld [vmem:[#allocation9 + $0x10] sm:$0xff]  ;;  %v3187_v30 = vpack.c.bf16 %v2353_v62, %v2352_v60  ;;  %v2458_v62 = vld [vmem:[#allocation11] sm:$0xff] }
 0x224   : > { %v2317_v25 = vadd.f32 %v4252_v55, %v4302_v4  ;;  %v3376_v26 = vpop.permute.xlu0 %3375  ;;  %v3383_v7 = vunpack.i.h.bf16 %v3381_v5  ;;  %v3382_v63 = vunpack.i.l.bf16 %v3381_v5  ;;  %v2334_v10 = vadd.f32 %v4258_v61, %v4298_v2  ;;  %v3586_v61 = vld [vmem:[#allocation8 + $0x43c] ss:$12 sps:$4 sm:$0xff]   ;;  %v2356_v5 = vld [vmem:[#allocation9 + $0x20] sm:$0xff] }
 0x225   : > { %v3378_v3 = vunpack.i.h.bf16 %v3376_v26  ;;  %v3377_v8 = vunpack.i.l.bf16 %v3376_v26  ;;  %1981 = vmatpush1.bf16.msra.mxu1 %v3578_v33  ;;  %v2355_v33 = vld [vmem:[#allocation9 + $0x18] sm:$0xff]  ;;  %3188 = vmatprep.subr.bf16.mxu0 %v3187_v30  ;;  %v2358_v26 = vld [vmem:[#allocation9 + $0x30] sm:$0xff] }
 0x226   : > { %v4315_v55 = vsel %vm2250_vm8, %v3382_v63, 0.0  ;;  %1982 = vmatprep.subr.bf16.mxu1 %v3583_v6  ;;  %v4326_v15 = vadd.f32 %v2317_v25, %v4311_v12  ;;  %v4335_v18 = vsel %vm2250_vm8, %v3383_v7, 0.0  ;;  %v3191_v34 = vpack.c.bf16 %v2355_v33, %v2354_v23  ;;  %v2357_v6 = vld [vmem:[#allocation9 + $0x28] sm:$0xff]  ;;  %3190 = vmatpush3.bf16.msra.mxu0 %v3187_v30  ;;  %v2359_v7 = vld [vmem:[#allocation9 + $0x38] sm:$0xff] }
 0x227   : > { %v4319_v13 = vsel %vm2232_vm7, %v3378_v3, 0.0  ;;  %v4323_v14 = vsel %vm2232_vm7, %v3377_v8, 0.0  ;;  %v4329_v16 = vadd.f32 %v2334_v10, %v4315_v55  ;;  %v3195_v25 = vpack.c.bf16 %v2357_v6, %v2356_v5  ;;  %v2459_v23 = vld [vmem:[#allocation11 + $0x8] sm:$0xff] }
 0x228   : > { %v2335_v17 = vadd.f32 %v4261_v0, %v4319_v13  ;;  %v2318_v19 = vadd.f32 %v4269_v1, %v4323_v14  ;;  %3192 = vmatprep.subr.bf16.mxu0 %v3191_v34  ;;  %v3199_v63 = vpack.c.bf16 %v2359_v7, %v2358_v26  ;;  %v4366_v30 = vpack.c.bf16 %v2459_v23, %v2458_v62 }
 0x229   : > { %v2338_v27 = vsub.f32 %v4326_v15, %v4329_v16  ;;  %1983 = vmatpush1.bf16.msra.mxu1 %v3581_v11 }
 0x22a   : > { %v4346_v28 = vadd.f32 %v2335_v17, %v4335_v18  ;;  %v4349_v0 = vadd.f32 %v2318_v19, %v4341_v22  ;;  %1984 = vmatprep.subr.bf16.mxu1 %v3586_v61  ;;  %3194 = vmatpush3.bf16.msra.mxu0 %v3191_v34  ;;  %v4357_v61 = vshrl.u32 %v847_v53, 7  ;;  %v4363_v19 = vld [vmem:[%s4467_s4] sm:$0x7] }
 0x22b   : > { %3196 = vmatprep.subr.bf16.mxu0 %v3195_v25 }
 0x22c   : > { %v2339_v1 = vsub.f32 %v4349_v0, %v4346_v28  ;;  %v857_v17 = vsub.s32 2, %v4357_v61 }
 0x22d   : > { %1985 = vmatpush1.bf16.msra.mxu1 %v3584_v39 }
 0x22e   : > { %1986 = vmatprep.subr.bf16.mxu1 %v3589_v40  ;;  %3198 = vmatpush3.bf16.msra.mxu0 %v3195_v25  ;;  %v858_v39 = vrot.slane %v4363_v19, %v857_v17  ;;  %v2268_v17 = vsel %vm2250_vm8, %v4288_v56, 0.0  ;;  %v2293_v56 = vsub.f32 %v4323_v14, %v4341_v22 }
 0x22f   : > { %3200 = vmatprep.subr.bf16.mxu0 %v3199_v63 }
 0x231   : > { %1987 = vmatpush1.bf16.msra.mxu1 %v3587_v41 }
 0x232   : > { %1988 = vmatprep.subr.bf16.mxu1 %v3592_v42  ;;  %3202 = vmatpush3.bf16.msra.mxu0 %v3199_v63 }
 0x235   : > { %1989 = vmatpush1.bf16.msra.mxu1 %v3590_v43 }
 0x236   : > { %2001 = vmatprep.subr.bf16.mxu1 %v3595_v44 }
 0x238   : > { %1991 = vmatmul.mubr.bf16.vlgmr.msra.gmra.mrb[0].mxu1 %v4249_v50  ;;  %v3608_v50 = vld [vmem:[#allocation8 + $0x4f8] ss:$12 sps:$4 sm:$0xff]  }
 0x239   : > { %2002 = vmatpush1.bf16.msra.mxu1 %v3593_v45  ;;  %2033 = vmatprep.mubr.bf16.mxu1 %v3844_v54  ;;  %v3611_v54 = vld [vmem:[#allocation8 + $0x510] ss:$12 sps:$4 sm:$0xff]  }
 0x23a   : > { %2003 = vmatprep.subr.bf16.mxu1 %v3598_v29 }
 0x23d   : > { %2004 = vmatpush1.bf16.msra.mxu1 %v3596_v32 }
 0x23e   : > { %2005 = vmatprep.subr.bf16.mxu1 %v3601_v46 }
 0x241   : > { %2006 = vmatpush1.bf16.msra.mxu1 %v3599_v47  ;;  %v2360_v47 = vld [vmem:[#allocation9 + $0x40] sm:$0xff] }
 0x242   : > { %2007 = vmatprep.subr.bf16.mxu1 %v3604_v48  ;;  %v2361_v48 = vld [vmem:[#allocation9 + $0x48] sm:$0xff] }
 0x245   : > { %2008 = vmatpush1.bf16.msra.mxu1 %v3602_v49  ;;  %v3203_v49 = vpack.c.bf16 %v2361_v48, %v2360_v47 }
 0x246   : > { %2009 = vmatprep.subr.bf16.mxu1 %v3607_v51  ;;  %v2362_v51 = vld [vmem:[#allocation9 + $0x50] sm:$0xff] }
 0x247   : > { %3204 = vmatprep.subr.bf16.mxu0 %v3203_v49 }
 0x248   : > { %3206 = vmatpush3.bf16.msra.mxu0 %v3203_v49 }
 0x249   : > { %2010 = vmatpush1.bf16.msra.mxu1 %v3605_v52  ;;  %v2363_v52 = vld [vmem:[#allocation9 + $0x58] sm:$0xff] }
 0x24a   : > { %2011 = vmatprep.subr.bf16.mxu1 %v3610_v37  ;;  %v2364_v37 = vld [vmem:[#allocation9 + $0x60] sm:$0xff] }
 0x24d   : > { %2012 = vmatpush1.bf16.msra.mxu1 %v3608_v50  ;;  %v3207_v50 = vpack.c.bf16 %v2363_v52, %v2362_v51 }
 0x24e   : > { %2013 = vmatprep.subr.bf16.mxu1 %v3613_v57  ;;  %v2365_v57 = vld [vmem:[#allocation9 + $0x68] sm:$0xff] }
 0x24f   : > { %3208 = vmatprep.subr.bf16.mxu0 %v3207_v50 }
 0x250   : > { %3210 = vmatpush3.bf16.msra.mxu0 %v3207_v50 }
 0x251   : > { %2014 = vmatpush1.bf16.msra.mxu1 %v3611_v54  ;;  %v3211_v54 = vpack.c.bf16 %v2365_v57, %v2364_v37 }
 0x252   : > { %2015 = vmatprep.subr.bf16.mxu1 %v3616_v58  ;;  %v2366_v58 = vld [vmem:[#allocation9 + $0x70] sm:$0xff] }
 0x253   : > { %3212 = vmatprep.subr.bf16.mxu0 %v3211_v54 }
 0x254   : > { %3214 = vmatpush3.bf16.msra.mxu0 %v3211_v54 }
 0x255   : > { %2016 = vmatpush1.bf16.msra.mxu1 %v3614_v59  ;;  %v2367_v59 = vld [vmem:[#allocation9 + $0x78] sm:$0xff] }
 0x256   : > { %v3215_v60 = vpack.c.bf16 %v2367_v59, %v2366_v58 }
 0x258   : > { %2034 = vmatmul.mubr.bf16.vlgmr.msra.gmra.mrb[0].mxu1 %v4266_v24  ;;  %3216 = vmatprep.subr.bf16.mxu0 %v3215_v60 }
 0x259   : > { %3218 = vmatpush3.bf16.msra.mxu0 %v3215_v60 }
 0x25a   : > { %3220 = vmatprep.subr.bf16.mxu0 %v4366_v30 }
 0x28a   : > { %v2935_v24 = vpop.f32.mrb[4].mxu0 }
 0x28b   : > { %v2936_v3 = vpop.f32.mrb[5].mxu0 }
 0x28c   : > { %v2937_v8 = vadd.f32 %v2936_v3, %v2935_v24  ;;  %v2938_v9 = vpop.f32.mrb[6].mxu0 }
 0x28d   : > { %v2939_v10 = vpop.f32.mrb[7].mxu0 }
 0x28e   : > { %v2940_v11 = vadd.f32 %v2939_v10, %v2938_v9  ;;  %v2079_v42 = vadd.f32 %v2937_v8, %v858_v39 }
 0x290   : > { %v2082_v29 = vadd.f32 %v2940_v11, %v858_v39  ;;  %v2267_v39 = vsel %vm2250_vm8, %v4290_v35, 0.0  ;;  %v853_v35 = vsub.s32 1, %v4357_v61 }
 0x2ab   : > { %v2957_v40 = vpop.f32.mrb[8].mxu0 }
 0x2ac   : > { %v2958_v41 = vpop.f32.mrb[9].mxu0 }
 0x2ad   : > { %v2959_v43 = vadd.f32 %v2958_v41, %v2957_v40  ;;  %v2960_v44 = vpop.f32.mrb[10].mxu0  ;;  %v2262_v40 = vsel %vm2232_vm7, %v4283_v31, 0.0  ;;  %v2261_v41 = vsel %vm2232_vm7, %v4285_v36, 0.0  ;;  %v2300_v31 = vsub.f32 %v4298_v2, %v4315_v55 }
 0x2ae   : > { %v2961_v45 = vpop.f32.mrb[11].mxu0  ;;  %v2342_v55 = vand.u32 2147483647, %v2338_v27 }
 0x2af   : > { %v2120_v32 = vadd.f32 %v2959_v43, %v2079_v42  ;;  %v2962_v46 = vadd.f32 %v2961_v45, %v2960_v44  ;;  %v2295_v42 = vsub.f32 %v2262_v40, %v2268_v17  ;;  %v2294_v43 = vsub.f32 %v2261_v41, %v2267_v39  ;;  %v2463_v17 = vld [vmem:[#allocation11 + $0x28] sm:$0xff]  ;;  %v2464_v39 = vld [vmem:[#allocation11 + $0x30] sm:$0xff]  ;;  %v2465_v40 = vld [vmem:[#allocation11 + $0x38] sm:$0xff] }
 0x2b0   : > { %v2292_v44 = vsub.f32 %v4302_v4, %v4311_v12  ;;  %v849_v45 = vsub.s32 0, %v4357_v61  ;;  %v2301_v4 = vsub.f32 %v4319_v13, %v4335_v18  ;;  %v2343_v18 = vand.u32 2147483647, %v2339_v1  ;;  %v2466_v41 = vld [vmem:[#allocation11 + $0x40] sm:$0xff] }
 0x2b1   : > { %v2123_v53 = vadd.f32 %v2962_v46, %v2082_v29  ;;  %v2297_v29 = vmul.f32 2.0, %v2295_v42  ;;  %v2467_v42 = vld [vmem:[#allocation11 + $0x48] sm:$0xff] }
 0x2b2   : > { %v850_v36 = vrot.slane %v4363_v19, %v849_v45  ;;  %v2471_v45 = vld [vmem:[#allocation11 + $0x68] sm:$0xff] }
 0x2b3   : > { %v2299_v38 = vadd.f32 %v2297_v29, %v2293_v56 }
 0x2b5   : > { %v2303_v14 = vadd.f32 %v2301_v4, %v2299_v38 }
 0x2b7   : > { %v2341_v54 = vand.u32 2147483647, %v2303_v14 }
 0x2b9   : > { %v2345_v15 = vadd.f32 %v2343_v18, %v2341_v54 }
 0x2bb   : > { %v2349_v28 = vmul.f32 2.0, %v2345_v15 }
 0x2cb   : > { %v2979_v33 = vpop.f32.mrb[12].mxu0 }
 0x2cc   : > { %v2980_v34 = vpop.f32.mrb[13].mxu0 }
 0x2cd   : > { %v2981_v5 = vadd.f32 %v2980_v34, %v2979_v33  ;;  %v2982_v6 = vpop.f32.mrb[14].mxu0 }
 0x2ce   : > { %v2983_v25 = vpop.f32.mrb[15].mxu0 }
 0x2cf   : > { %v2984_v26 = vadd.f32 %v2983_v25, %v2982_v6  ;;  %v2161_v7 = vadd.f32 %v2981_v5, %v2120_v32  ;;  %v2296_v32 = vmul.f32 2.0, %v2294_v43  ;;  %v2468_v43 = vld [vmem:[#allocation11 + $0x50] sm:$0xff] }
 0x2d1   : > { %v2164_v63 = vadd.f32 %v2984_v26, %v2123_v53  ;;  %v2298_v46 = vadd.f32 %v2296_v32, %v2292_v44  ;;  %v854_v53 = vrot.slane %v4363_v19, %v853_v35  ;;  %v2469_v44 = vld [vmem:[#allocation11 + $0x58] sm:$0xff]  ;;  %v2472_v35 = vld [vmem:[#allocation11 + $0x70] sm:$0xff] }
 0x2d2   : > { %v3239_v56 = vpack.c.bf16 %v2469_v44, %v2468_v43  ;;  %v2473_v32 = vld [vmem:[#allocation11 + $0x78] sm:$0xff] }
 0x2d3   : > { %v2302_v47 = vadd.f32 %v2300_v31, %v2298_v46  ;;  %v3247_v31 = vpack.c.bf16 %v2473_v32, %v2472_v35  ;;  %v2884_v46 = vld [vmem:[%s4469_s6] ss:$0 sm:$0xff] }
 0x2d5   : > { %v2340_v51 = vand.u32 2147483647, %v2302_v47 }
 0x2d7   : > { %v2344_v6 = vadd.f32 %v2342_v55, %v2340_v51 }
 0x2ec   : > { %v2201_v24 = vpop.f32.mrb[16].mxu0 }
 0x2ed   : > { %v2202_v3 = vadd.f32 %v2201_v24, %v2161_v7  ;;  %v3083_v8 = vpop.f32.mrb[17].mxu0  ;;  %v2460_v24 = vld [vmem:[#allocation11 + $0x10] sm:$0xff] }
 0x2ee   : > { %v2204_v9 = vpop.f32.mrb[18].mxu0  ;;  %v2461_v8 = vld [vmem:[#allocation11 + $0x18] sm:$0xff] }
 0x2ef   : > { %v2205_v10 = vadd.f32 %v2204_v9, %v2164_v63  ;;  %v3084_v11 = vpop.f32.mrb[19].mxu0  ;;  %v2210_v50 = vmul.f32 0.01, %v2202_v3  ;;  %v2348_v63 = vmul.f32 2.0, %v2344_v6 }
 0x2f0   : > { %v2462_v11 = vld [vmem:[#allocation11 + $0x20] sm:$0xff] }
 0x2f1   : > { %v2213_v59 = vmul.f32 0.01, %v2205_v10  ;;  %v2216_v33 = vmax.f32 %v2202_v3, %v2210_v50  ;;  %v3223_v3 = vpack.c.bf16 %v2461_v8, %v2460_v24 }
 0x2f3   : > { %v2219_v16 = vmax.f32 %v2205_v10, %v2213_v59  ;;  %v3227_v10 = vpack.c.bf16 %v2463_v17, %v2462_v11 }
 0x32b   : > { %v2035_v12 = vpop.f32.mrb[0].mxu1 }
 0x32c   : > { %v3251_v22 = vadd.f32 %v2035_v12, %v850_v36  ;;  %v2037_v48 = vpop.f32.mrb[1].mxu1 }
 0x32d   : > { %v3252_v61 = vadd.f32 %v2037_v48, %v854_v53  ;;  %v2039_v49 = vpop.f32.mrb[2].mxu1  ;;  %v2455_v48 = vld [vmem:[%s4130_s26 + $0x8] sm:$0xff] }
 0x32e   : > { %v2208_v52 = vmul.f32 0.01, %v3251_v22  ;;  %v3253_v37 = vadd.f32 %v2039_v49, %v850_v36  ;;  %v2041_v2 = vpop.f32.mrb[3].mxu1 }
 0x32f   : > { %v2209_v19 = vmul.f32 0.01, %v3252_v61  ;;  %v3254_v57 = vadd.f32 %v2041_v2, %v854_v53 }
 0x330   : > { %v2214_v58 = vmax.f32 %v3251_v22, %v2208_v52  ;;  %v2211_v13 = vmul.f32 0.01, %v3253_v37  ;;  %v2454_v22 = vld [vmem:[%s4130_s26] sm:$0xff]  ;;  %v2885_v52 = vld [vmem:[%s4471_s8] ss:$0 sm:$0xff]  ;;  %s2894_s26 = sshll.u32 %s3922_s13, 8 }
 0x331   : > { %v2215_v60 = vmax.f32 %v3252_v61, %v2209_v19  ;;  %v2212_v62 = vmul.f32 0.01, %v3254_v57  ;;  %s4418_s19 = scalar_lea.hbm %s4502_s9, %s2894_s26  ;;  %s3849_s13 = smov [#allocation12]  }
 0x332   : > { %v2217_v23 = vmax.f32 %v3253_v37, %v2211_v13  ;;  %s3763_s20 = sshll.u32 %s3849_s13, 4  ;;  %s3764_s20 = int_to_ptr.vmem [resolvable:$false] %s3763_s20 }
 0x333   : > { %v2220_v34 = vadd.f32 %v2215_v60, %v2214_v58  ;;  %v2218_v5 = vmax.f32 %v3254_v57, %v2212_v62  ;;  %s3765_s29 = scalar_lea.vmem %s3764_s20, 512  ;;  %p3766_p12 = scmp.lt.s32.totalorder %s4413_s24, %s3764_s20 }
 0x334   : > { %p3767_p1 = scmp.lt.s32.totalorder %s3765_s29, %s3759_s25 }
 0x335   : > { %v2222_v27 = vadd.f32 %v2220_v34, %v2216_v33  ;;  %v2221_v25 = vadd.f32 %v2218_v5, %v2217_v23 }
 0x336   : > { %p3768_p2 = por %p3767_p1, %p3766_p12 }
 0x337   : > { %v2223_v26 = vadd.f32 %v2221_v25, %v2219_v16  ;;  %v2346_v7 = vadd.f32 %v2222_v27, %v4153_v21  ;;  %v3231_v21 = vpack.c.bf16 %v2465_v40, %v2464_v39 }
 0x338   : > { %p3769_p13 = pnand %p3768_p2, %p3762_p7 }
 0x339   : > { %v2347_v0 = vadd.f32 %v2223_v26, %v4151_v20  ;;  %v2350_v1 = vadd.f32 %v2348_v63, %v2346_v7  ;;  %v3235_v20 = vpack.c.bf16 %v2467_v42, %v2466_v41 }
 0x33b   : > { %3117 = vmatprep.mubr.f32.mxu0 %v2350_v1  ;;  %v2351_v9 = vadd.f32 %v2349_v28, %v2347_v0 }
 0x33d   : > { %3118 = vmatmul.mubr.f32.vlgmr.msra.gmra.mrb[2].mxu0 %v2351_v9 }
 0x33e   : > { %3222 = vmatpush3.bf16.msra.mxu0 %v4366_v30  ;;  %v2470_v30 = vld [vmem:[#allocation11 + $0x60] sm:$0xff] }
 0x33f   : > { %3224 = vmatprep.subr.bf16.mxu0 %v3223_v3  ;;  %v3243_v29 = vpack.c.bf16 %v2471_v45, %v2470_v30 }
 0x342   : > { %3226 = vmatpush3.bf16.msra.mxu0 %v3223_v3 }
 0x343   : > { %3228 = vmatprep.subr.bf16.mxu0 %v3227_v10 }
 0x346   : > { %3230 = vmatpush3.bf16.msra.mxu0 %v3227_v10 }
 0x347   : > { %3232 = vmatprep.subr.bf16.mxu0 %v3231_v21 }
 0x34a   : > { %3234 = vmatpush3.bf16.msra.mxu0 %v3231_v21 }
 0x34b   : > { %3236 = vmatprep.subr.bf16.mxu0 %v3235_v20 }
 0x34e   : > { %3238 = vmatpush3.bf16.msra.mxu0 %v3235_v20 }
 0x34f   : > { %3240 = vmatprep.subr.bf16.mxu0 %v3239_v56 }
 0x352   : > { %3242 = vmatpush3.bf16.msra.mxu0 %v3239_v56 }
 0x353   : > { %3244 = vmatprep.subr.bf16.mxu0 %v3243_v29 }
 0x356   : > { %3246 = vmatpush3.bf16.msra.mxu0 %v3243_v29 }
 0x357   : > { %3248 = vmatprep.subr.bf16.mxu0 %v3247_v31 }
 0x35a   : > { %3250 = vmatpush3.bf16.msra.mxu0 %v3247_v31 }
 0x410   : > { %v3119_v38 = vpop.f32.mrb[2].mxu0 }
 0x411   : > { %v2447_v36 = vadd.f32 %v3119_v38, %v2884_v46  ;;  %v2441_v53 = vpop.f32.mrb[3].mxu0 }
 0x412   : > { %v2442_v47 = vadd.f32 %v2884_v46, %v2441_v53 }
 0x413   : > { %v2451_v4 = vmul.f32 0.01, %v2447_v36 }
 0x414   : > { %v2450_v12 = vmul.f32 0.01, %v2442_v47 }
 0x415   : > { %v2453_v14 = vmax.f32 %v2447_v36, %v2451_v4 }
 0x416   : > { %v2452_v61 = vmax.f32 %v2442_v47, %v2450_v12 }
 0x417   : > { %v2457_v51 = vadd.f32 %v2455_v48, %v2453_v14 }
 0x418   : > { %v2456_v49 = vadd.f32 %v2454_v22, %v2452_v61 }
 0x41a   : > { %3152 = vmatprep.mubr.f32.mxu0 %v2456_v49 }
 0x41b   : > { %3153 = vmatmul.mubr.f32.vlgmr.msra.gmra.mrb[20].mxu0 %v2457_v51 }
 0x4ee   : > { %v3154_v37 = vpop.f32.mrb[20].mxu0 }
 0x4ef   : > { %v2553_v2 = vadd.f32 %v3154_v37, %v2885_v52  ;;  %v2547_v55 = vpop.f32.mrb[21].mxu0 }
 0x4f0   : > { %v2548_v50 = vadd.f32 %v2885_v52, %v2547_v55 }
 0x4f1   : > { %v2557_v19 = vmul.f32 0.01, %v2553_v2 }
 0x4f2   : > { %v2556_v57 = vmul.f32 0.01, %v2548_v50 }
 0x4f3   : > { %v2559_v54 = vmax.f32 %v2553_v2, %v2557_v19 }
 0x4f4   : > { %v2558_v58 = vmax.f32 %v2548_v50, %v2556_v57 }
 0x4f5   : > { %2561 = vst [vmem:[%s408_s23 + $0x8] sm:$0xff] %v2559_v54 }
 0x4f6   : > { %2560 = vst [vmem:[%s408_s23] sm:$0xff] %v2558_v58 }
 0x4f7   : > { %3772 = shalt.err (!%p3769_p13)
}
 0x4f8   : > { %s3773_s18 = scalar_lea.hbm %s4418_s19, 256  ;;  %s3777_s26 = scalar_lea.hbm %s4502_s9, 512 }
 0x4f9   : > { %p3774_p9 = scmp.ne.s32.totalorder %s4418_s19, %s3773_s18  ;;  %p3778_p4 = scmp.lt.u32.totalorder %s4418_s19, %s4502_s9 }
 0x4fa   : > { %p3779_p8 = scmp.lt.u32.totalorder %s3777_s26, %s3773_s18  ;;  %p3781_p3 = scmp.lt.u32.totalorder %s3773_s18, %s4418_s19 }
 0x4fb   : > { %p3775_p0 = pnand %p3774_p9, %p4069_p10 }
 0x4fc   : > { %p3780_p6 = por %p3779_p8, %p3778_p4 }
 0x4fd   : > { %p3776_p11 = pneg %p3775_p0 }
 0x4fe   : > { %p3782_p5 = por %p3781_p3, %p3780_p6 }
 0x500   : > { %p3783_p7 = pnand %p3782_p5, %p3776_p11 }
 0x502   : > { %3786 = shalt.err (!%p3783_p7)
}
 0x503   : > { %s3850_s25 = smov 128  }
 0x504   : > { %3285 = dma.vmem_to_hbm [thread:$0]  (%p4069_p10), %s4413_s24, 256, %s4418_s19, %s2563_s21, %s3850_s25, %s3850_s25, %s3845_s22  }
 0x505 PF: > { %s4503_s13 = sld [smem:[#allocation17_spill]]  ;;  %s4504_s20 = sld [smem:[#allocation18_spill]] }
 0x506   : > { %p4506_p1 = scmp.ge.s32.totalorder %s3833_s12, 2 }
 0x50b   : > { %s2591_s29 = sand.u32 1, %s4503_s13   ;;  %p4505_p12 = scmp.ne.s32.totalorder %s4504_s20, 0 }
 0x50c   : > { %s2592_s18 = scalar_lea.sflag [#allocation5], %s2591_s29 }
 0x50d   : > { %p3305_p2 = pnand %p4506_p1, %p4505_p12 }
 0x50f   : > { %3816 = dma.done.wait (!%p3305_p2), %s2592_s18, 256  }
 0x510   : > { %3818 = vsyncadd (!%p3305_p2), %s2592_s18, 4294967040  ;;  %p24_p13 = scmp.ge.s32.totalorder %s4059_s14, 4   ;;  %s4507_s30 = smov %s3825_s10 }
 0x511   : > { %s4508_s10 = smov %s3829_s11  ;;  %s4509_s11 = smov %s4075_s27 }
 0x512   : > { %s4510_s12 = smov %s4059_s14  ;;  %26 = sbr.rel (!%p24_p13) target bundleno = 9 (0x9), region = 117 }
 0x519   :  { %2597 = vsyncpa [#allocation4], 1 }
 0x51a   :  { %2599 = vsyncpa [#allocation4 + $0x1], 1 }
 0x51b   :  { %2600 = vsyncpa [#allocation7], 1 }
 0x51c   :  { %2601 = vsyncpa [#allocation10], 1 }
 0x51d   :  { %2602 = vsyncpa [#allocation5], 1 }
 0x51e   :  { %2604 = vsyncpa [#allocation5 + $0x1], 1 }

</bundles_post_ra>
